<compile_context>
chip_gen: v7x
topology: tpu7x:2x2x1
jax: 0.10.0
libtpu: 0.0.40
codegen_flags: <defaults>
</compile_context>

<pallas_src>
import functools

import jax
import jax.numpy as jnp
from jax.experimental import pallas as pl
from jax.experimental.pallas import tpu as pltpu


def _ceil_to(x, m):
    return -(-x // m) * m


def _pick_tile_oh(oh, ow, row_cap=512):
    """Largest divisor t of OH such that t*OW <= row_cap matmul rows AND the
    output lane block t*OW is a multiple of 128 (unmasked, lane-dense stores).
    Falls back to one row tile (full OH) only when no such divisor exists."""
    cands = [t for t in range(1, oh + 1)
             if oh % t == 0 and t * ow <= row_cap and (t * ow) % 128 == 0]
    if cands:
        return max(cands)
    if oh * ow > 8 * row_cap:
        # TODO(synk): add an OW tile axis to the grid for very wide planes
        # instead of a single giant row tile.
        raise NotImplementedError(
            f"no lane-dense OH tiling for OH={oh}, OW={ow}")
    return oh


def _vmem_bytes(shape, itemsize=4):
    """Conservative VMEM footprint of one buffer: last two dims padded to the
    (8, 128) register tile."""
    lead = 1
    for d in shape[:-2]:
        lead *= d
    return lead * _ceil_to(shape[-2], 8) * _ceil_to(shape[-1], 128) * itemsize


def _conv_block_kernel(x_ref, w_ref, b_ref, o_ref, xpad_ref, *,
                       kh, kw, stride, pad, tile_oh, ow, h, w, cin, cin_p,
                       cout_p):
    """One (batch, OH-row-tile) per grid step.

    x_ref   : (1, H, W, Cin)          un-padded image (resident across rows)
    w_ref   : (KH*KW*Cin_p, Cout_p)   im2col weights, (kh, kw, ci)-major rows
    b_ref   : (Cout_p, 1)             bias
    o_ref   : (1, Cout_p, TILE_OH*OW) channel-major, lane-dense output tile
    xpad_ref: (Hp, Wp, Cin_p)         zero-padded image scratch (VMEM)
    """
    r = pl.program_id(1)

    # Zero padding folded in: fill the padded-image scratch once per image.
    # The row axis is "arbitrary" (sequential), so r == 0 runs first per image.
    @pl.when(r == 0)
    def _fill_padded():
        if pad > 0 or cin_p != cin:
            xpad_ref[...] = jnp.zeros_like(xpad_ref)
        xpad_ref[pad:pad + h, pad:pad + w, 0:cin] = x_ref[0]

    row0 = pl.multiple_of(r * (tile_oh * stride), tile_oh * stride)

    # im2col: one row-band load per kernel row (reused by the kw taps); taps
    # packed along the contraction axis in (kh, kw, ci) order.
    taps = []
    for dh in range(kh):
        if stride == 1:
            band = xpad_ref[pl.ds(row0 + dh, tile_oh), :, :]   # (t, Wp, Cin_p)
            for dw in range(kw):
                taps.append(band[:, dw:dw + ow, :])
        else:
            # One strided load per W phase, shared across the kw taps that use
            # that phase (instead of kh*kw doubly-strided gathers per step).
            phase_cols = {}
            for dw in range(kw):
                p, q = dw % stride, dw // stride
                phase_cols[p] = max(phase_cols.get(p, 0), q + ow)
            h_idx = pl.ds(row0 + dh, tile_oh, stride)
            bands = {p: xpad_ref[h_idx, pl.ds(p, n, stride), :]
                     for p, n in phase_cols.items()}
            for dw in range(kw):
                p, q = dw % stride, dw // stride
                taps.append(bands[p][:, q:q + ow, :])
    patches = jnp.concatenate(taps, axis=-1)           # (t, ow, kh*kw*Cin_p)
    patches = patches.reshape(tile_oh * ow, kh * kw * cin_p)

    # Single MXU matmul, transposed so the result is already channel-major
    # with a lane-dense spatial axis: (Cout_p, TILE_OH*OW).  No output
    # relayout / reshape needed before the store.
    y = jax.lax.dot_general(w_ref[...], patches,
                            dimension_numbers=(((0,), (1,)), ((), ())),
                            preferred_element_type=jnp.float32)
    y = y + b_ref[...].astype(jnp.float32)              # bias
    y = jnp.maximum(y, 0.0)                              # ReLU (act_first=False)
    o_ref[0] = y.astype(o_ref.dtype)


def conv2d_block(x_nchw, weight, bias, *, stride=1, padding=0):
    """Conv2dBlock forward, PyTorch layout (NCHW in / NCHW out).

    x_nchw: (N, Cin, H, W)   weight: (KH, KW, Cin, Cout)   bias: (Cout,)
    returns (N, Cout, OH, OW)
    """
    n, cin, h, w = x_nchw.shape
    kh, kw, wcin, cout = weight.shape
    assert wcin == cin, (wcin, cin)

    hp, wp = h + 2 * padding, w + 2 * padding
    oh = (hp - kh) // stride + 1
    ow = (wp - kw) // stride + 1
    tile_oh = _pick_tile_oh(oh, ow)
    tile_sp = tile_oh * ow

    # Channel padding to 8-lane groups; zero weight rows/cols keep it exact.
    cin_p = _ceil_to(cin, 8)
    cout_p = _ceil_to(cout, 8)

    # Channels-last input gives lane-friendly tap slices; the channel-major
    # kernel output means no transpose is needed on the way out.
    x_nhwc = jnp.transpose(x_nchw, (0, 2, 3, 1))

    w_p = jnp.pad(weight,
                  ((0, 0), (0, 0), (0, cin_p - cin), (0, cout_p - cout)))
    w2d = w_p.reshape(kh * kw * cin_p, cout_p)        # (kh, kw, ci)-major rows
    b2d = jnp.pad(bias, (0, cout_p - cout)).reshape(cout_p, 1)

    kernel = functools.partial(
        _conv_block_kernel, kh=kh, kw=kw, stride=stride, pad=padding,
        tile_oh=tile_oh, ow=ow, h=h, w=w, cin=cin, cin_p=cin_p, cout_p=cout_p)

    # VMEM budget derived from the actual block / scratch sizes (+ headroom),
    # clamped to v7x's 64 MiB physical VMEM.
    est = (2 * _vmem_bytes((1, h, w, cin))                 # input, 2 buffers
           + 2 * _vmem_bytes((kh * kw * cin_p, cout_p))    # weights
           + 2 * _vmem_bytes((cout_p, 1))                  # bias
           + 2 * _vmem_bytes((1, cout_p, tile_sp))         # output, 2 buffers
           + _vmem_bytes((hp, wp, cin_p))                  # padded scratch
           + 4 * _vmem_bytes((tile_sp, kh * kw * cin_p)))  # patches/temps
    vmem_limit = int(min(64 * 2**20, max(32 * 2**20, 2 * est + (4 << 20))))

    out = pl.pallas_call(
        kernel,
        out_shape=jax.ShapeDtypeStruct((n, cout_p, oh * ow), x_nchw.dtype),
        grid_spec=pltpu.PrefetchScalarGridSpec(
            num_scalar_prefetch=0,
            grid=(n, oh // tile_oh),
            in_specs=[
                # Un-padded image; block index constant along the row axis ->
                # DMA'd once per batch element, reused for every row tile.
                pl.BlockSpec((1, h, w, cin), lambda b, r: (b, 0, 0, 0)),
                pl.BlockSpec((kh * kw * cin_p, cout_p), lambda b, r: (0, 0)),
                pl.BlockSpec((cout_p, 1), lambda b, r: (0, 0)),
            ],
            out_specs=pl.BlockSpec((1, cout_p, tile_sp),
                                   lambda b, r: (b, 0, r)),
            scratch_shapes=[pltpu.VMEM((hp, wp, cin_p), x_nchw.dtype)],
        ),
        compiler_params=pltpu.CompilerParams(
            dimension_semantics=("parallel", "arbitrary"),
            vmem_limit_bytes=vmem_limit),
    )(x_nhwc, w2d, b2d)

    if cout_p != cout:
        out = out[:, :cout, :]
    return out.reshape(n, cout, oh, ow)


def _reference(x_nchw, weight, bias, *, stride, padding):
    """Pure-JAX reference (lax conv) for correctness check."""
    w_oihw = jnp.transpose(weight, (3, 2, 0, 1))  # (Cout, Cin, KH, KW)
    y = jax.lax.conv_general_dilated(
        x_nchw, w_oihw,
        window_strides=(stride, stride),
        padding=[(padding, padding), (padding, padding)],
        dimension_numbers=("NCHW", "OIHW", "NCHW"),
    )
    y = y + bias[None, :, None, None]
    return jnp.maximum(y, 0.0)


if __name__ == "__main__":
    # Small Conv2dBlock: input_dim=4, output_dim=8, kernel=3.
    N, CIN, H, W = 2, 4, 16, 16
    COUT, K = 8, 3

    key = jax.random.PRNGKey(0)
    kx, kwt, kb = jax.random.split(key, 3)
    x = jax.random.normal(kx, (N, CIN, H, W), dtype=jnp.float32)
    weight = jax.random.normal(kwt, (K, K, CIN, COUT), dtype=jnp.float32) * 0.1
    bias = jax.random.normal(kb, (COUT,), dtype=jnp.float32) * 0.1

    # stride=1 (same-size conv) and stride=2 (downsampling conv), both pad=1.
    for stride, padding in ((1, 1), (2, 1)):
        out = conv2d_block(x, weight, bias, stride=stride, padding=padding)
        out = jax.block_until_ready(out)
        ref = _reference(x, weight, bias, stride=stride, padding=padding)
        assert out.shape == ref.shape, (out.shape, ref.shape)
        assert jnp.allclose(out, ref, atol=1e-4, rtol=1e-4), (
            f"mismatch vs reference (stride={stride}, padding={padding})")
    print("KERNEL_OK")
</pallas_src>

<mosaic_0001>
module attributes {stable_mosaic.version = 11 : i64} {
  func.func @_conv_block_kernel(%arg0: i32, %arg1: i32, %arg2: memref<1x16x16x4xf32, #tpu.memory_space<vmem>>, %arg3: memref<72x8xf32, #tpu.memory_space<vmem>>, %arg4: memref<8x1xf32, #tpu.memory_space<vmem>>, %arg5: memref<1x8x256xf32, #tpu.memory_space<vmem>>, %arg6: memref<18x18x8xf32, #tpu.memory_space<vmem>>) attributes {dimension_semantics = [#tpu.dimension_semantics<parallel>, #tpu.dimension_semantics<arbitrary>], iteration_bounds = array<i64: 2, 1>, scalar_prefetch = 0 : i64, scratch_operands = 1 : i64, tpu.core_type = #tpu.core_type<tc>, window_params = [{transform_indices = @transform_0, window_bounds = array<i64: 1, 16, 16, 4>}, {pipeline_mode = #tpu.pipeline_mode<synchronous>, transform_indices = @transform_1, window_bounds = array<i64: 72, 8>}, {pipeline_mode = #tpu.pipeline_mode<synchronous>, transform_indices = @transform_2, window_bounds = array<i64: 8, 1>}, {transform_indices = @transform_3, window_bounds = array<i64: 1, 8, 256>}]} {
    %c0_i32 = arith.constant 0 : i32
    %0 = arith.cmpi eq, %arg1, %c0_i32 : i32
    %1 = arith.extui %0 : i1 to i32
    %c0_i32_0 = arith.constant 0 : i32
    %2 = arith.cmpi ne, %1, %c0_i32_0 : i32
    scf.if %2 {
      %cst_15 = arith.constant 0.000000e+00 : f32
      %35 = vector.broadcast %cst_15 : f32 to vector<18x18x8xf32>
      %c0_16 = arith.constant 0 : index
      %c0_17 = arith.constant 0 : index
      %c0_18 = arith.constant 0 : index
      %36 = vector.load %arg6[%c0_16, %c0_17, %c0_18] : memref<18x18x8xf32, #tpu.memory_space<vmem>>, vector<18x18x8xf32>
      tpu.vector_store %arg6[%c0_16, %c0_17, %c0_18], %35 {strides = array<i32>} : memref<18x18x8xf32, #tpu.memory_space<vmem>>, vector<18x18x8xf32>,
      %c0_19 = arith.constant 0 : index
      %c0_20 = arith.constant 0 : index
      %c0_21 = arith.constant 0 : index
      %c0_22 = arith.constant 0 : index
      %37 = vector.load %arg2[%c0_19, %c0_20, %c0_21, %c0_22] : memref<1x16x16x4xf32, #tpu.memory_space<vmem>>, vector<1x16x16x4xf32>
      %38 = vector.shape_cast %37 : vector<1x16x16x4xf32> to vector<16x16x4xf32>
      %c1 = arith.constant 1 : index
      %c1_23 = arith.constant 1 : index
      %c0_24 = arith.constant 0 : index
      %39 = vector.load %arg6[%c1, %c1_23, %c0_24] : memref<18x18x8xf32, #tpu.memory_space<vmem>>, vector<16x16x4xf32>
      tpu.vector_store %arg6[%c1, %c1_23, %c0_24], %38 {strides = array<i32>} : memref<18x18x8xf32, #tpu.memory_space<vmem>>, vector<16x16x4xf32>,
    } else {
    }
    %c16_i32 = arith.constant 16 : i32
    %3 = arith.muli %arg1, %c16_i32 : i32
    %4 = tpu.assume_multiple %3, 16 : i32
    %c0_i32_1 = arith.constant 0 : i32
    %5 = arith.addi %4, %c0_i32_1 : i32
    %6 = arith.index_cast %5 : i32 to index
    %c0 = arith.constant 0 : index
    %c0_2 = arith.constant 0 : index
    %7 = vector.load %arg6[%6, %c0, %c0_2] : memref<18x18x8xf32, #tpu.memory_space<vmem>>, vector<16x18x8xf32>
    %8 = vector.extract_strided_slice %7 {offsets = [0, 0, 0], sizes = [16, 16, 8], strides = [1, 1, 1]} : vector<16x18x8xf32> to vector<16x16x8xf32>
    %9 = vector.extract_strided_slice %7 {offsets = [0, 1, 0], sizes = [16, 16, 8], strides = [1, 1, 1]} : vector<16x18x8xf32> to vector<16x16x8xf32>
    %10 = vector.extract_strided_slice %7 {offsets = [0, 2, 0], sizes = [16, 16, 8], strides = [1, 1, 1]} : vector<16x18x8xf32> to vector<16x16x8xf32>
    %c1_i32 = arith.constant 1 : i32
    %11 = arith.addi %4, %c1_i32 : i32
    %12 = arith.index_cast %11 : i32 to index
    %c0_3 = arith.constant 0 : index
    %c0_4 = arith.constant 0 : index
    %13 = vector.load %arg6[%12, %c0_3, %c0_4] : memref<18x18x8xf32, #tpu.memory_space<vmem>>, vector<16x18x8xf32>
    %14 = vector.extract_strided_slice %13 {offsets = [0, 0, 0], sizes = [16, 16, 8], strides = [1, 1, 1]} : vector<16x18x8xf32> to vector<16x16x8xf32>
    %15 = vector.extract_strided_slice %13 {offsets = [0, 1, 0], sizes = [16, 16, 8], strides = [1, 1, 1]} : vector<16x18x8xf32> to vector<16x16x8xf32>
    %16 = vector.extract_strided_slice %13 {offsets = [0, 2, 0], sizes = [16, 16, 8], strides = [1, 1, 1]} : vector<16x18x8xf32> to vector<16x16x8xf32>
    %c2_i32 = arith.constant 2 : i32
    %17 = arith.addi %4, %c2_i32 : i32
    %18 = arith.index_cast %17 : i32 to index
    %c0_5 = arith.constant 0 : index
    %c0_6 = arith.constant 0 : index
    %19 = vector.load %arg6[%18, %c0_5, %c0_6] : memref<18x18x8xf32, #tpu.memory_space<vmem>>, vector<16x18x8xf32>
    %20 = vector.extract_strided_slice %19 {offsets = [0, 0, 0], sizes = [16, 16, 8], strides = [1, 1, 1]} : vector<16x18x8xf32> to vector<16x16x8xf32>
    %21 = vector.extract_strided_slice %19 {offsets = [0, 1, 0], sizes = [16, 16, 8], strides = [1, 1, 1]} : vector<16x18x8xf32> to vector<16x16x8xf32>
    %22 = vector.extract_strided_slice %19 {offsets = [0, 2, 0], sizes = [16, 16, 8], strides = [1, 1, 1]} : vector<16x18x8xf32> to vector<16x16x8xf32>
    %23 = tpu.concatenate %8, %9, %10, %14, %15, %16, %20, %21, %22 in 2 : vector<16x16x8xf32>, vector<16x16x8xf32>, vector<16x16x8xf32>, vector<16x16x8xf32>, vector<16x16x8xf32>, vector<16x16x8xf32>, vector<16x16x8xf32>, vector<16x16x8xf32>, vector<16x16x8xf32> -> vector<16x16x72xf32>
    %24 = vector.shape_cast %23 : vector<16x16x72xf32> to vector<256x72xf32>
    %c0_7 = arith.constant 0 : index
    %c0_8 = arith.constant 0 : index
    %25 = vector.load %arg3[%c0_7, %c0_8] : memref<72x8xf32, #tpu.memory_space<vmem>>, vector<72x8xf32>
    %cst = arith.constant dense<0.000000e+00> : vector<8x256xf32>
    %26 = tpu.matmul %25, %24, %cst {dimension_numbers = #tpu.dot_dimension_numbers<[0], [1], [1], [0], [0, 1, 1, 0], [], []>} : vector<72x8xf32>, vector<256x72xf32>, vector<8x256xf32> -> vector<8x256xf32>
    %c0_9 = arith.constant 0 : index
    %c0_10 = arith.constant 0 : index
    %27 = vector.load %arg4[%c0_9, %c0_10] : memref<8x1xf32, #tpu.memory_space<vmem>>, vector<8x1xf32>
    %28 = vector.broadcast %27 : vector<8x1xf32> to vector<8x256xf32>
    %29 = arith.addf %26, %28 : vector<8x256xf32>
    %cst_11 = arith.constant 0.000000e+00 : f32
    %30 = vector.broadcast %cst_11 : f32 to vector<8x256xf32>
    %31 = arith.maximumf %29, %30 : vector<8x256xf32>
    %c0_12 = arith.constant 0 : index
    %c0_13 = arith.constant 0 : index
    %c0_14 = arith.constant 0 : index
    %32 = vector.load %arg5[%c0_12, %c0_13, %c0_14] : memref<1x8x256xf32, #tpu.memory_space<vmem>>, vector<1x8x256xf32>
    %33 = vector.shape_cast %32 : vector<1x8x256xf32> to vector<8x256xf32>
    %34 = vector.shape_cast %31 : vector<8x256xf32> to vector<1x8x256xf32>
    tpu.vector_store %arg5[%c0_12, %c0_13, %c0_14], %34 {strides = array<i32>} : memref<1x8x256xf32, #tpu.memory_space<vmem>>, vector<1x8x256xf32>,
    return
  }
  func.func @transform_0(%arg0: i32, %arg1: i32) -> (i32, i32, i32, i32) {
    %c0_i32 = arith.constant 0 : i32
    %c0_i32_0 = arith.constant 0 : i32
    %c0_i32_1 = arith.constant 0 : i32
    %c0_i32_2 = arith.constant 0 : i32
    return %arg0, %c0_i32, %c0_i32_0, %c0_i32_1 : i32, i32, i32, i32
  }
  func.func @transform_1(%arg0: i32, %arg1: i32) -> (i32, i32) {
    %c0_i32 = arith.constant 0 : i32
    %c0_i32_0 = arith.constant 0 : i32
    %c0_i32_1 = arith.constant 0 : i32
    return %c0_i32, %c0_i32_0 : i32, i32
  }
  func.func @transform_2(%arg0: i32, %arg1: i32) -> (i32, i32) {
    %c0_i32 = arith.constant 0 : i32
    %c0_i32_0 = arith.constant 0 : i32
    %c0_i32_1 = arith.constant 0 : i32
    return %c0_i32, %c0_i32_0 : i32, i32
  }
  func.func @transform_3(%arg0: i32, %arg1: i32) -> (i32, i32, i32) {
    %c0_i32 = arith.constant 0 : i32
    %c0_i32_0 = arith.constant 0 : i32
    return %arg0, %c0_i32, %arg1 : i32, i32, i32
  }
}

</mosaic_0001>

<bundles_post_ra>
// kernel: tpu_custom_call.1
= control target key start
LH: loop header
LB: loop body
LE: loop exit
PB: predicated region body
PF: predicated region fallthrough
CT: control target
= control target key end

     0   :  { %8 = vsyncpa [#allocation4], 0  ;;  %s5702_s0 = inlined_call_operand.vmem [shape: f32[2,16,16,4], index: 0, kind: input, shape index: {}]   ;;  %s5703_s1 = inlined_call_operand.vmem [shape: f32[72,8], index: 1, kind: input, shape index: {}]   ;;  %s5704_s2 = inlined_call_operand.vmem [shape: f32[8,1], index: 2, kind: input, shape index: {}]   ;;  %s5705_s3 = inlined_call_operand.hbm [shape: f32[2,8,256], index: 3, kind: output, shape index: {}]  }
   0x1   :  { %10 = vsyncpa [#allocation4 + $0x1], 0  ;;  %s3516_s12 = smov 0   ;;  %s3518_s13 = smov 0  }
   0x2   :  { %s3520_s14 = smov 0   ;;  %s3522_s15 = smov 0  }
   0x3   :  { %s3524_s16 = smov 0   ;;  %s3526_s17 = smov 0  }
   0x4 LB: > { %s2440_s18 = sadd.s32 4294967295, %s3483_s17   ;;  %s2441_s19 = sadd.s32 4294967294, %s3483_s17   ;;  %s3483_s17 = sphi %s3526_s17, %s16_s17   ;;  %s3479_s16 = sphi %s3524_s16, %s6113_s16   ;;  %s3475_s15 = sphi %s3522_s15, %s6112_s15   ;;  %s3471_s14 = sphi %s3520_s14, %s6111_s14   ;;  %s3467_s13 = sphi %s3518_s13, %s6110_s13   ;;  %s3463_s12 = sphi %s3516_s12, %s6109_s12  }
   0x5   : > { %s28_s20 = sadd.s32 1, %s3479_s16  ;;  %s105_s21 = sadd.s32 1, %s3471_s14 }
   0x6   : > { %p30_p0 = scmp.ge.s32.totalorder %s28_s20, 2  ;;  %p115_p1 = scmp.ne.s32.totalorder %s3471_s14, %s3467_s13 }
   0x7   : > { %p116_p2 = scmp.eq.s32.totalorder %s2440_s18, 1  ;;  %p121_p3 = scmp.ne.s32.totalorder %s3467_s13, %s3463_s12 }
   0x8   : > { %s6115_s20 = smov (%p30_p0, %s28_s20), 0  ;;  %p122_p5 = scmp.eq.s32.totalorder %s2441_s19, 1 }
   0x9   : > { %p3556_p4 = por %p116_p2, %p115_p1  ;;  %s100_s23 = ssub.s32 %s3479_s16, %s6115_s20 }
   0xa   : > { %p2444_p6 = scmp.ge.s32.totalorder %s3483_s17, 1  ;;  %p103_p7 = scmp.eq.s32.totalorder %s100_s23, 0 }
   0xb   : > { %p3563_p8 = por %p122_p5, %p121_p3  ;;  %p154_p9 = scmp.lt.s32.totalorder %s3483_s17, 3 }
   0xc   : > { %s3569_s25 = scalar_select %p103_p7, %s3471_s14, %s105_s21  }
   0xd   : > { %p155_p10 = pnand %p2444_p6, %p154_p9 }
   0xf   : > { %158 = sbr.rel (%p155_p10) target bundleno = 717 (0x2cd), region = 32 }
  0x16   : > { %vm188_vm0 = vcmask 64512   ;;  %vm191_vm1 = vcmask 58368   ;;  %p178_p11 = scmp.lt.s32.totalorder %s3475_s15, 1  ;;  %v3485_v0 = vmov 0.0   ;;  %vm277_vm2 = vcmask 31744   ;;  %s3486_s4 = smov 8  }
  0x17   : > { %189 = vst.msk [vmem:[#allocation2] sm:$0xff] %vm188_vm0, %v3485_v0  ;;  %190 = vst.msk [vmem:[#allocation2 + $0x8] sm:$0xff] %vm188_vm0, %v3485_v0  ;;  %vm511_vm3 = vcmask 1046528   ;;  %vm688_vm4 = vcmask 1045504   ;;  %s3487_s5 = smov 16   ;;  %s3488_s6 = smov 24  }
  0x18   : > { %192 = vst.msk [vmem:[#allocation2 + $0x10] sm:$0x3] %vm191_vm1, %v3485_v0  ;;  %195 = vst.msk [vmem:[#allocation2 + $0x28] sm:$0x3] %vm191_vm1, %v3485_v0  ;;  %s179_s26 = scalar_select %p178_p11, %s3475_s15, 1  ;;  %vm1890_vm5 = vcmask 130048  }
  0x19   : > { %193 = vst.msk [vmem:[#allocation2 + $0x18] sm:$0xff] %vm188_vm0, %v3485_v0  ;;  %194 = vst.msk [vmem:[#allocation2 + $0x20] sm:$0xff] %vm188_vm0, %v3485_v0  ;;  %s3489_s7 = smov 32   ;;  %s3490_s8 = smov 40   ;;  %vm1923_vm6 = vcmask 195584   ;;  %vm1956_vm7 = vcmask 261120  }
  0x1a   : > { %196 = vst.msk [vmem:[#allocation2 + $0x30] sm:$0xff] %vm188_vm0, %v3485_v0  ;;  %197 = vst.msk [vmem:[#allocation2 + $0x38] sm:$0xff] %vm188_vm0, %v3485_v0  ;;  %s2582_s27 = sshll.u32 %s179_s26, 8  ;;  %s3491_s9 = smov 48   ;;  %vm1989_vm8 = vcmask 326656   ;;  %vm2022_vm9 = vcmask 392192  }
  0x1b   : > { %198 = vst.msk [vmem:[#allocation2 + $0x40] sm:$0x3] %vm191_vm1, %v3485_v0  ;;  %201 = vst.msk [vmem:[#allocation2 + $0x58] sm:$0x3] %vm191_vm1, %v3485_v0  ;;  %s3632_s30 = scalar_lea.vmem %s5702_s0, %s2582_s27  ;;  %s3492_s10 = smov 56   ;;  %vm2055_vm10 = vcmask 457728  }
  0x1c   : > { %199 = vst.msk [vmem:[#allocation2 + $0x48] sm:$0xff] %vm188_vm0, %v3485_v0  ;;  %200 = vst.msk [vmem:[#allocation2 + $0x50] sm:$0xff] %vm188_vm0, %v3485_v0  ;;  %v246_v1 = vld [vmem:[%s3632_s30 + $0x10] sm:$0xff]  ;;  %v247_v2 = vld [vmem:[%s3632_s30 + $0x18] sm:$0xff]  ;;  %s3493_s11 = smov 64   ;;  %vm2088_vm11 = vcmask 523264  }
  0x1d   : > { %202 = vst.msk [vmem:[#allocation2 + $0x60] sm:$0xff] %vm188_vm0, %v3485_v0  ;;  %203 = vst.msk [vmem:[#allocation2 + $0x68] sm:$0xff] %vm188_vm0, %v3485_v0  ;;  %v244_v3 = vld [vmem:[%s3632_s30] sm:$0xff]  ;;  %v245_v4 = vld [vmem:[%s3632_s30 + $0x8] sm:$0xff]  ;;  %vm2168_vm12 = vcmask 588800   ;;  %s175_s23 = sand.u32 1, %s3467_s13  }
  0x1e   : > { %204 = vst.msk [vmem:[#allocation2 + $0x70] sm:$0x3] %vm191_vm1, %v3485_v0  ;;  %207 = vst.msk [vmem:[#allocation2 + $0x88] sm:$0x3] %vm191_vm1, %v3485_v0  ;;  %v248_v5 = vld [vmem:[%s3632_s30 + $0x20] sm:$0xff]  ;;  %v249_v6 = vld [vmem:[%s3632_s30 + $0x28] sm:$0xff] }
  0x1f   : > { %205 = vst.msk [vmem:[#allocation2 + $0x78] sm:$0xff] %vm188_vm0, %v3485_v0  ;;  %206 = vst.msk [vmem:[#allocation2 + $0x80] sm:$0xff] %vm188_vm0, %v3485_v0  ;;  %v3643_v7 = vld [vmem:[#allocation2] sm:$0xff]  ;;  %v3645_v8 = vld [vmem:[#allocation2 + $0x8] sm:$0xff]  ;;  %s2445_s26 = sshll.u32 %s175_s23, 4  ;;  %s2583_s27 = sshll.u32 %s3475_s15, 8 }
  0x20   : > { %208 = vst.msk [vmem:[#allocation2 + $0x90] sm:$0xff] %vm188_vm0, %v3485_v0  ;;  %209 = vst.msk [vmem:[#allocation2 + $0x98] sm:$0xff] %vm188_vm0, %v3485_v0  ;;  %v3647_v9 = vld [vmem:[#allocation2 + $0x10] sm:$0x3]  ;;  %v512_v10 = vrot.slane %v3643_v7, 1  ;;  %v513_v11 = vrot.slane %v3645_v8, 1 }
  0x21   : > { %210 = vst.msk [vmem:[#allocation2 + $0xa0] sm:$0x3] %vm191_vm1, %v3485_v0  ;;  %213 = vst.msk [vmem:[#allocation2 + $0xb8] sm:$0x3] %vm191_vm1, %v3485_v0  ;;  %v515_v12 = vrot.slane %v3647_v9, 1  ;;  %v250_v13 = vld [vmem:[%s3632_s30 + $0x30] sm:$0xff] }
  0x22   : > { %211 = vst.msk [vmem:[#allocation2 + $0xa8] sm:$0xff] %vm188_vm0, %v3485_v0  ;;  %212 = vst.msk [vmem:[#allocation2 + $0xb0] sm:$0xff] %vm188_vm0, %v3485_v0  ;;  %v251_v14 = vld [vmem:[%s3632_s30 + $0x38] sm:$0xff]  ;;  %v252_v15 = vld [vmem:[%s3632_s30 + $0x40] sm:$0xff]  ;;  %v514_v18 = vsel %vm511_vm3, %v512_v10, %v513_v11  ;;  %s177_s28 = scalar_lea.vmem [#allocation3], %s2445_s26  ;;  %s3495_s15 = smov [#allocation3]  }
  0x23   : > { %214 = vst.msk [vmem:[#allocation2 + $0xc0] sm:$0xff] %vm188_vm0, %v3485_v0  ;;  %215 = vst.msk [vmem:[#allocation2 + $0xc8] sm:$0xff] %vm188_vm0, %v3485_v0  ;;  %v253_v16 = vld [vmem:[%s3632_s30 + $0x48] sm:$0xff]  ;;  %v254_v17 = vld [vmem:[%s3632_s30 + $0x50] sm:$0xff]  ;;  %v516_v19 = vsel %vm511_vm3, %v513_v11, %v515_v12  ;;  %s2360_s29 = sshll.u32 %s177_s28, 4  ;;  %s5657_s29 = int_to_ptr.vmem [resolvable:$true] %s2360_s29 }
  0x24   : > { %216 = vst.msk [vmem:[#allocation2 + $0xd0] sm:$0x3] %vm191_vm1, %v3485_v0  ;;  %219 = vst.msk [vmem:[#allocation2 + $0xe8] sm:$0x3] %vm191_vm1, %v3485_v0  ;;  %v255_v20 = vld [vmem:[%s3632_s30 + $0x58] sm:$0xff]  ;;  %v256_v21 = vld [vmem:[%s3632_s30 + $0x60] sm:$0xff]  ;;  %v2731_v23 = vpack.i.bf16 %v516_v19, %v514_v18 }
  0x25   : > { %217 = vst.msk [vmem:[#allocation2 + $0xd8] sm:$0xff] %vm188_vm0, %v3485_v0  ;;  %218 = vst.msk [vmem:[#allocation2 + $0xe0] sm:$0xff] %vm188_vm0, %v3485_v0  ;;  %v257_v22 = vld [vmem:[%s3632_s30 + $0x68] sm:$0xff]  ;;  %v258_v24 = vld [vmem:[%s3632_s30 + $0x70] sm:$0xff] }
  0x26   : > { %220 = vst.msk [vmem:[#allocation2 + $0xf0] sm:$0xff] %vm188_vm0, %v3485_v0  ;;  %221 = vst.msk [vmem:[#allocation2 + $0xf8] sm:$0xff] %vm188_vm0, %v3485_v0  ;;  %v259_v25 = vld [vmem:[%s3632_s30 + $0x78] sm:$0xff]  ;;  %v260_v26 = vld [vmem:[%s3632_s30 + $0x80] sm:$0xff]  ;;  %2732 = vrot.lane.b32.xlu0 %v2731_v23, %s3486_s4 }
  0x27   : > { %222 = vst.msk [vmem:[#allocation2 + $0x100] sm:$0x3] %vm191_vm1, %v3485_v0  ;;  %225 = vst.msk [vmem:[#allocation2 + $0x118] sm:$0x3] %vm191_vm1, %v3485_v0  ;;  %v261_v27 = vld [vmem:[%s3632_s30 + $0x88] sm:$0xff]  ;;  %v262_v28 = vld [vmem:[%s3632_s30 + $0x90] sm:$0xff] }
  0x28   : > { %223 = vst.msk [vmem:[#allocation2 + $0x108] sm:$0xff] %vm188_vm0, %v3485_v0  ;;  %224 = vst.msk [vmem:[#allocation2 + $0x110] sm:$0xff] %vm188_vm0, %v3485_v0  ;;  %v263_v29 = vld [vmem:[%s3632_s30 + $0x98] sm:$0xff] }
  0x29   : > { %226 = vst.msk [vmem:[#allocation2 + $0x120] sm:$0xff] %vm188_vm0, %v3485_v0  ;;  %227 = vst.msk [vmem:[#allocation2 + $0x128] sm:$0xff] %vm188_vm0, %v3485_v0 }
  0x2a   : > { %228 = vst.msk [vmem:[#allocation2 + $0x130] sm:$0x3] %vm191_vm1, %v3485_v0  ;;  %231 = vst.msk [vmem:[#allocation2 + $0x148] sm:$0x3] %vm191_vm1, %v3485_v0 }
  0x2b   : > { %229 = vst.msk [vmem:[#allocation2 + $0x138] sm:$0xff] %vm188_vm0, %v3485_v0  ;;  %230 = vst.msk [vmem:[#allocation2 + $0x140] sm:$0xff] %vm188_vm0, %v3485_v0 }
  0x2c   : > { %232 = vst.msk [vmem:[#allocation2 + $0x150] sm:$0xff] %vm188_vm0, %v3485_v0  ;;  %233 = vst.msk [vmem:[#allocation2 + $0x158] sm:$0xff] %vm188_vm0, %v3485_v0 }
  0x2d   : > { %234 = vst.msk [vmem:[#allocation2 + $0x160] sm:$0x3] %vm191_vm1, %v3485_v0  ;;  %237 = vst.msk [vmem:[#allocation2 + $0x178] sm:$0x3] %vm191_vm1, %v3485_v0 }
  0x2e   : > { %235 = vst.msk [vmem:[#allocation2 + $0x168] sm:$0xff] %vm188_vm0, %v3485_v0  ;;  %236 = vst.msk [vmem:[#allocation2 + $0x170] sm:$0xff] %vm188_vm0, %v3485_v0 }
  0x2f   : > { %238 = vst.msk [vmem:[#allocation2 + $0x180] sm:$0xff] %vm188_vm0, %v3485_v0  ;;  %239 = vst.msk [vmem:[#allocation2 + $0x188] sm:$0xff] %vm188_vm0, %v3485_v0 }
  0x30   : > { %240 = vst.msk [vmem:[#allocation2 + $0x190] sm:$0x3] %vm191_vm1, %v3485_v0  ;;  %243 = vst.msk [vmem:[#allocation2 + $0x1a8] sm:$0x3] %vm191_vm1, %v3485_v0 }
  0x31   : > { %241 = vst.msk [vmem:[#allocation2 + $0x198] sm:$0xff] %vm188_vm0, %v3485_v0  ;;  %242 = vst.msk [vmem:[#allocation2 + $0x1a0] sm:$0xff] %vm188_vm0, %v3485_v0 }
  0x32   : > { %280 = vst.msk [vmem:[#allocation2 + $0x31] sm:$0xff] %vm277_vm2, %v246_v1  ;;  %281 = vst.msk [vmem:[#allocation2 + $0x39] sm:$0xff] %vm277_vm2, %v247_v2 }
  0x33   : > { %278 = vst.msk [vmem:[#allocation2 + $0x19] sm:$0xff] %vm277_vm2, %v244_v3  ;;  %279 = vst.msk [vmem:[#allocation2 + $0x21] sm:$0xff] %vm277_vm2, %v245_v4 }
  0x34   : > { %282 = vst.msk [vmem:[#allocation2 + $0x49] sm:$0xff] %vm277_vm2, %v248_v5  ;;  %283 = vst.msk [vmem:[#allocation2 + $0x51] sm:$0xff] %vm277_vm2, %v249_v6 }
  0x35   : > { %284 = vst.msk [vmem:[#allocation2 + $0x61] sm:$0xff] %vm277_vm2, %v250_v13  ;;  %285 = vst.msk [vmem:[#allocation2 + $0x69] sm:$0xff] %vm277_vm2, %v251_v14 }
  0x36   : > { %286 = vst.msk [vmem:[#allocation2 + $0x79] sm:$0xff] %vm277_vm2, %v252_v15  ;;  %287 = vst.msk [vmem:[#allocation2 + $0x81] sm:$0xff] %vm277_vm2, %v253_v16 }
  0x37   : > { %288 = vst.msk [vmem:[#allocation2 + $0x91] sm:$0xff] %vm277_vm2, %v254_v17  ;;  %289 = vst.msk [vmem:[#allocation2 + $0x99] sm:$0xff] %vm277_vm2, %v255_v20 }
  0x38   : > { %290 = vst.msk [vmem:[#allocation2 + $0xa9] sm:$0xff] %vm277_vm2, %v256_v21  ;;  %291 = vst.msk [vmem:[#allocation2 + $0xb1] sm:$0xff] %vm277_vm2, %v257_v22 }
  0x39   : > { %292 = vst.msk [vmem:[#allocation2 + $0xc1] sm:$0xff] %vm277_vm2, %v258_v24  ;;  %293 = vst.msk [vmem:[#allocation2 + $0xc9] sm:$0xff] %vm277_vm2, %v259_v25  ;;  %v3683_v30 = vld [vmem:[#allocation2 + $0x30] sm:$0xff]  ;;  %v3685_v31 = vld [vmem:[#allocation2 + $0x38] sm:$0xff] }
  0x3a   : > { %294 = vst.msk [vmem:[#allocation2 + $0xd9] sm:$0xff] %vm277_vm2, %v260_v26  ;;  %5819 = vst [vmem:[#allocation6_spill] sm:$0xff] %v3685_v31  ;;  %v3687_v32 = vld [vmem:[#allocation2 + $0x40] sm:$0x3]  ;;  %v522_v33 = vrot.slane %v3683_v30, 1  ;;  %v3694_v34 = vrot.slane %v3685_v31, 1 }
  0x3b   : > { %295 = vst.msk [vmem:[#allocation2 + $0xe1] sm:$0xff] %vm277_vm2, %v261_v27  ;;  %296 = vst.msk [vmem:[#allocation2 + $0xf1] sm:$0xff] %vm277_vm2, %v262_v28  ;;  %v525_v35 = vrot.slane %v3687_v32, 1  ;;  %v3697_v36 = vld [vmem:[#allocation2 + $0x18] sm:$0xff]  ;;  %v3699_v37 = vld [vmem:[#allocation2 + $0x20] sm:$0xff] }
  0x3c   : > { %297 = vst.msk [vmem:[#allocation2 + $0xf9] sm:$0xff] %vm277_vm2, %v263_v29  ;;  %5820 = vst [vmem:[#allocation7_spill] sm:$0xff] %v3697_v36  ;;  %v3701_v38 = vld [vmem:[#allocation2 + $0x28] sm:$0x3]  ;;  %v517_v39 = vrot.slane %v3697_v36, 1  ;;  %v3705_v40 = vrot.slane %v3699_v37, 1  ;;  %v3713_v43 = vsel %vm511_vm3, %v522_v33, %v3694_v34 }
  0x3d   : > { %5821 = vst [vmem:[#allocation8_spill] sm:$0xff] %v3699_v37  ;;  %v3707_v41 = vld [vmem:[#allocation2 + $0x48] sm:$0xff]  ;;  %v3709_v42 = vld [vmem:[#allocation2 + $0x50] sm:$0xff]  ;;  %5823 = vst [vmem:[#allocation10_spill] sm:$0xff] %v3713_v43  ;;  %v526_v44 = vsel %vm511_vm3, %v3694_v34, %v525_v35  ;;  %v520_v45 = vrot.slane %v3701_v38, 1 }
  0x3e   : > { %5822 = vst [vmem:[#allocation9_spill] sm:$0xff] %v3709_v42  ;;  %v3718_v46 = vld [vmem:[#allocation2 + $0x58] sm:$0x3]  ;;  %v527_v47 = vrot.slane %v3707_v41, 1  ;;  %v3721_v48 = vld [vmem:[#allocation2 + $0x60] sm:$0xff]  ;;  %v3723_v49 = vld [vmem:[#allocation2 + $0x68] sm:$0xff]  ;;  %v2741_v50 = vpack.i.bf16 %v526_v44, %v3713_v43  ;;  %v3728_v51 = vsel %vm511_vm3, %v517_v39, %v3705_v40 }
  0x3f   : > { %5824 = vst [vmem:[#allocation11_spill] sm:$0xff] %v3728_v51  ;;  %v3731_v52 = vrot.slane %v3709_v42, 1  ;;  %v530_v53 = vrot.slane %v3718_v46, 1  ;;  %v3734_v54 = vld [vmem:[#allocation2 + $0x70] sm:$0x3]  ;;  %v3736_v55 = vld [vmem:[#allocation2 + $0x78] sm:$0xff]  ;;  %v521_v57 = vsel %vm511_vm3, %v3705_v40, %v520_v45  ;;  %vm5258_vm13 = vmpackc.low %vm2168_vm12, %vm2168_vm12 }
  0x40   : > { %v3738_v56 = vld [vmem:[#allocation2 + $0x80] sm:$0xff]  ;;  %v532_v58 = vrot.slane %v3721_v48, 1  ;;  %v3744_v59 = vrot.slane %v3723_v49, 1  ;;  %v535_v60 = vrot.slane %v3734_v54, 1  ;;  %v3747_v61 = vld [vmem:[#allocation2 + $0x88] sm:$0x3]  ;;  %2742 = vrot.lane.b32.xlu1 %v2741_v50, %s3486_s4  ;;  %v2736_v63 = vpack.i.bf16 %v521_v57, %v3728_v51 }
  0x41   : > { %5825 = vst [vmem:[#allocation12_spill] sm:$0xff] %v3731_v52  ;;  %v3749_v62 = vld [vmem:[#allocation2 + $0x90] sm:$0xff]  ;;  %v3755_v0 = vsel %vm511_vm3, %v527_v47, %v3731_v52  ;;  %v531_v1 = vsel %vm511_vm3, %v3731_v52, %v530_v53  ;;  %v537_v2 = vrot.slane %v3736_v55, 1  ;;  %v3760_v3 = vld [vmem:[#allocation2 + $0x98] sm:$0xff]  ;;  %v3762_v4 = vld [vmem:[#allocation2 + $0xa0] sm:$0x3] }
  0x42   : > { %5826 = vst [vmem:[#allocation13_spill] sm:$0xff] %v3744_v59  ;;  %5827 = vst [vmem:[#allocation14_spill] sm:$0xff] %v3755_v0  ;;  %v3764_v5 = vld [vmem:[#allocation2 + $0xa8] sm:$0xff]  ;;  %v2746_v6 = vpack.i.bf16 %v531_v1, %v3755_v0  ;;  %v3769_v10 = vsel %vm511_vm3, %v532_v58, %v3744_v59  ;;  %v536_v11 = vsel %vm511_vm3, %v3744_v59, %v535_v60  ;;  %v3774_v12 = vrot.slane %v3738_v56, 1  ;;  %v3776_v13 = vld [vmem:[#allocation2 + $0xb0] sm:$0xff] }
  0x43   : > { %5828 = vst [vmem:[#allocation15_spill] sm:$0xff] %v3769_v10  ;;  %v3778_v14 = vld [vmem:[#allocation2 + $0xb8] sm:$0x3]  ;;  %v3780_v15 = vld [vmem:[#allocation2 + $0xc0] sm:$0xff]  ;;  %2737 = vrot.lane.b32.xlu0 %v2736_v63, %s3486_s4  ;;  %v2751_v16 = vpack.i.bf16 %v536_v11, %v3769_v10  ;;  %v540_v17 = vrot.slane %v3747_v61, 1  ;;  %v542_v18 = vrot.slane %v3749_v62, 1 }
  0x44   : > { %5829 = vst [vmem:[#allocation16_spill] sm:$0xff] %v3774_v12  ;;  %v3787_v19 = vrot.slane %v3760_v3, 1  ;;  %v3789_v20 = vld [vmem:[#allocation2 + $0xc8] sm:$0xff]  ;;  %v3791_v21 = vld [vmem:[#allocation2 + $0xd0] sm:$0x3]  ;;  %v3795_v22 = vsel %vm511_vm3, %v537_v2, %v3774_v12  ;;  %v545_v23 = vrot.slane %v3762_v4, 1  ;;  %2747 = vrot.lane.b32.xlu1 %v2746_v6, %s3486_s4 }
  0x45   : > { %5831 = vst [vmem:[#allocation18_spill] sm:$0xff] %v3795_v22  ;;  %v547_v24 = vrot.slane %v3764_v5, 1  ;;  %v3800_v25 = vrot.slane %v3776_v13, 1  ;;  %v3802_v26 = vld [vmem:[#allocation2 + $0xd8] sm:$0xff]  ;;  %v3804_v27 = vld [vmem:[#allocation2 + $0xe0] sm:$0xff]  ;;  %v3806_v28 = vld [vmem:[#allocation2 + $0xf0] sm:$0xff]  ;;  %v541_v29 = vsel %vm511_vm3, %v3774_v12, %v540_v17 }
  0x46   : > { %5830 = vst [vmem:[#allocation17_spill] sm:$0xff] %v3787_v19  ;;  %v3813_v33 = vsel %vm511_vm3, %v542_v18, %v3787_v19  ;;  %v550_v35 = vrot.slane %v3778_v14, 1  ;;  %v552_v39 = vrot.slane %v3780_v15, 1  ;;  %v3817_v44 = vld [vmem:[#allocation2 + $0xe8] sm:$0x3]  ;;  %v3819_v45 = vld [vmem:[#allocation2 + $0xf8] sm:$0xff]  ;;  %v2756_v50 = vpack.i.bf16 %v541_v29, %v3795_v22 }
  0x47   : > { %5832 = vst [vmem:[#allocation19_spill] sm:$0xff] %v3800_v25  ;;  %5833 = vst [vmem:[#allocation20_spill] sm:$0xff] %v3813_v33  ;;  %v264_v47 = vld [vmem:[%s3632_s30 + $0xa0] sm:$0xff]  ;;  %v546_v53 = vsel %vm511_vm3, %v3787_v19, %v545_v23  ;;  %v3827_v57 = vsel %vm511_vm3, %v547_v24, %v3800_v25  ;;  %v3830_v58 = vrot.slane %v3789_v20, 1  ;;  %v265_v63 = vld [vmem:[%s3632_s30 + $0xa8] sm:$0xff]  ;;  %2752 = vrot.lane.b32.xlu0 %v2751_v16, %s3486_s4  ;;  %v555_v11 = vrot.slane %v3791_v21, 1 }
  0x48   : > { %5834 = vst [vmem:[#allocation21_spill] sm:$0xff] %v3819_v45  ;;  %5835 = vst [vmem:[#allocation22_spill] sm:$0xff] %v3827_v57  ;;  %v3832_v60 = vld [vmem:[#allocation2 + $0x100] sm:$0x3]  ;;  %v266_v1 = vld [vmem:[%s3632_s30 + $0xb0] sm:$0xff]  ;;  %v2761_v2 = vpack.i.bf16 %v546_v53, %v3813_v33  ;;  %v551_v6 = vsel %vm511_vm3, %v3800_v25, %v550_v35  ;;  %v557_v17 = vrot.slane %v3802_v26, 1  ;;  %2757 = vrot.lane.b32.xlu1 %v2756_v50, %s3486_s4 }
  0x49   : > { %5836 = vst [vmem:[#allocation23_spill] sm:$0xff] %v3830_v58  ;;  %298 = vst.msk [vmem:[#allocation2 + $0x109] sm:$0xff] %vm277_vm2, %v264_v47  ;;  %v267_v18 = vld [vmem:[%s3632_s30 + $0xb8] sm:$0xff]  ;;  %v268_v23 = vld [vmem:[%s3632_s30 + $0xc0] sm:$0xff]  ;;  %v2766_v16 = vpack.i.bf16 %v551_v6, %v3827_v57  ;;  %v3851_v29 = vsel %vm511_vm3, %v552_v39, %v3830_v58  ;;  %v3854_v35 = vrot.slane %v3804_v27, 1  ;;  %v560_v47 = vrot.slane %v3817_v44, 1 }
  0x4a   : > { %299 = vst.msk [vmem:[#allocation2 + $0x111] sm:$0xff] %vm277_vm2, %v265_v63  ;;  %300 = vst.msk [vmem:[#allocation2 + $0x121] sm:$0xff] %vm277_vm2, %v266_v1  ;;  %v269_v24 = vld [vmem:[%s3632_s30 + $0xc8] sm:$0xff]  ;;  %v270_v53 = vld [vmem:[%s3632_s30 + $0xd0] sm:$0xff]  ;;  %v556_v39 = vsel %vm511_vm3, %v3830_v58, %v555_v11  ;;  %v562_v6 = vrot.slane %v3806_v28, 1  ;;  %v3868_v57 = vrot.slane %v3819_v45, 1 }
  0x4b   : > { %5837 = vst [vmem:[#allocation24_spill] sm:$0xff] %v3851_v29  ;;  %5838 = vst [vmem:[#allocation25_spill] sm:$0xff] %v3854_v35  ;;  %v271_v63 = vld [vmem:[%s3632_s30 + $0xd8] sm:$0xff]  ;;  %v272_v1 = vld [vmem:[%s3632_s30 + $0xe0] sm:$0xff]  ;;  %v3879_v50 = vsel %vm511_vm3, %v557_v17, %v3854_v35  ;;  %v561_v11 = vsel %vm511_vm3, %v3854_v35, %v560_v47  ;;  %2762 = vrot.lane.b32.xlu0 %v2761_v2, %s3486_s4  ;;  %v690_v17 = vrot.slane %v3645_v8, 2  ;;  %v697_v8 = vrot.slane %v3701_v38, 2 }
  0x4c   : > { %301 = vst.msk [vmem:[#allocation2 + $0x129] sm:$0xff] %vm277_vm2, %v267_v18  ;;  %302 = vst.msk [vmem:[#allocation2 + $0x139] sm:$0xff] %vm277_vm2, %v268_v23  ;;  %v565_v18 = vrot.slane %v3832_v60, 1  ;;  %v273_v23 = vld [vmem:[%s3632_s30 + $0xe8] sm:$0xff]  ;;  %v275_v25 = vld [vmem:[%s3632_s30 + $0xf8] sm:$0xff]  ;;  %v3894_v47 = vsel %vm511_vm3, %v562_v6, %v3868_v57  ;;  %2767 = vrot.lane.b32.xlu1 %v2766_v16, %s3486_s4  ;;  %v3916_v16 = vrot.slane %v3685_v31, 2 }
  0x4d   : > { %303 = vst.msk [vmem:[#allocation2 + $0x141] sm:$0xff] %vm277_vm2, %v269_v24  ;;  %5839 = vst [vmem:[#allocation26_spill] sm:$0xff] %v3868_v57  ;;  %v274_v24 = vld [vmem:[%s3632_s30 + $0xf0] sm:$0xff] }
  0x4e   : > { %304 = vst.msk [vmem:[#allocation2 + $0x151] sm:$0xff] %vm277_vm2, %v270_v53  ;;  %305 = vst.msk [vmem:[#allocation2 + $0x159] sm:$0xff] %vm277_vm2, %v271_v63  ;;  %v692_v53 = vrot.slane %v3647_v9, 2  ;;  %v2771_v63 = vpack.i.bf16 %v556_v39, %v3851_v29  ;;  %v2776_v9 = vpack.i.bf16 %v561_v11, %v3879_v50 }
  0x4f   : > { %306 = vst.msk [vmem:[#allocation2 + $0x169] sm:$0xff] %vm277_vm2, %v272_v1  ;;  %5840 = vst [vmem:[#allocation27_spill] sm:$0xff] %v3879_v50  ;;  %v689_v1 = vrot.slane %v3643_v7, 2  ;;  %v3904_v7 = vrot.slane %v3699_v37, 2 }
  0x50   : > { %307 = vst.msk [vmem:[#allocation2 + $0x171] sm:$0xff] %vm277_vm2, %v273_v23  ;;  %308 = vst.msk [vmem:[#allocation2 + $0x181] sm:$0xff] %vm277_vm2, %v274_v24  ;;  %v566_v23 = vsel %vm511_vm3, %v3868_v57, %v565_v18  ;;  %v3901_v2 = vld [vmem:[#allocation2 + $0x108] sm:$0xff]  ;;  %2772 = vrot.lane.b32.xlu0 %v2771_v63, %s3486_s4  ;;  %v3943_v0 = vsel %vm688_vm4, %v690_v17, %v692_v53  ;;  %2777 = vrot.lane.b32.xlu1 %v2776_v9, %s3486_s4 }
  0x51   : > { %309 = vst.msk [vmem:[#allocation2 + $0x189] sm:$0xff] %vm277_vm2, %v275_v25  ;;  %5841 = vst [vmem:[#allocation28_spill] sm:$0xff] %v3894_v47  ;;  %v694_v25 = vrot.slane %v3697_v36, 2  ;;  %v3908_v6 = vld [vmem:[#allocation2 + $0x110] sm:$0xff]  ;;  %v3910_v24 = vld [vmem:[#allocation2 + $0x118] sm:$0x3]  ;;  %v2781_v11 = vpack.i.bf16 %v566_v23, %v3894_v47  ;;  %v3940_v59 = vsel %vm688_vm4, %v689_v1, %v690_v17 }
  0x52   : > { %v567_v18 = vrot.slane %v3901_v2, 1  ;;  %v3913_v58 = vld [vmem:[#allocation2 + $0x120] sm:$0xff]  ;;  %v3921_v29 = vrot.slane %v3908_v6, 1  ;;  %v570_v38 = vrot.slane %v3910_v24, 1 }
  0x53   : > { %v3924_v39 = vld [vmem:[#allocation2 + $0x128] sm:$0xff]  ;;  %v3926_v33 = vld [vmem:[#allocation2 + $0x130] sm:$0x3]  ;;  %v572_v19 = vrot.slane %v3913_v58, 1  ;;  %v3933_v10 = vld [vmem:[#allocation2 + $0x138] sm:$0xff] }
  0x54   : > { %5842 = vst [vmem:[#allocation29_spill] sm:$0xff] %v3921_v29  ;;  %v3930_v22 = vrot.slane %v3924_v39, 1  ;;  %v575_v12 = vrot.slane %v3926_v33, 1  ;;  %5844 = vst [vmem:[#allocation31_spill] sm:$0xff] %v3933_v10  ;;  %v3935_v63 = vld [vmem:[#allocation2 + $0x140] sm:$0xff]  ;;  %v3948_v52 = vsel %vm511_vm3, %v567_v18, %v3921_v29  ;;  %v571_v31 = vsel %vm511_vm3, %v3921_v29, %v570_v38  ;;  %2782 = vrot.lane.b32.xlu0 %v2781_v11, %s3486_s4 }
  0x55   : > { %5845 = vst [vmem:[#allocation32_spill] sm:$0xff] %v3935_v63  ;;  %v3937_v23 = vld [vmem:[#allocation2 + $0x148] sm:$0x3]  ;;  %5846 = vst [vmem:[#allocation33_spill] sm:$0xff] %v3948_v52  ;;  %v577_v37 = vrot.slane %v3933_v10, 1  ;;  %v3954_v36 = vrot.slane %v3935_v63, 1  ;;  %v2786_v17 = vpack.i.bf16 %v571_v31, %v3948_v52 }
  0x56   : > { %5843 = vst [vmem:[#allocation30_spill] sm:$0xff] %v3930_v22  ;;  %v3956_v47 = vld [vmem:[#allocation2 + $0x150] sm:$0xff]  ;;  %v3958_v1 = vld [vmem:[#allocation2 + $0x158] sm:$0xff]  ;;  %v3960_v53 = vld [vmem:[#allocation2 + $0x160] sm:$0x3]  ;;  %v3965_v9 = vsel %vm511_vm3, %v572_v19, %v3930_v22  ;;  %v576_v18 = vsel %vm511_vm3, %v3930_v22, %v575_v12  ;;  %v580_v38 = vrot.slane %v3937_v23, 1 }
  0x57   : > { %5847 = vst [vmem:[#allocation34_spill] sm:$0xff] %v3954_v36  ;;  %5848 = vst [vmem:[#allocation35_spill] sm:$0xff] %v3956_v47  ;;  %v3970_v29 = vld [vmem:[#allocation2 + $0x168] sm:$0xff]  ;;  %v3972_v57 = vld [vmem:[#allocation2 + $0x170] sm:$0xff]  ;;  %v2791_v43 = vpack.i.bf16 %v576_v18, %v3965_v9  ;;  %v3980_v31 = vsel %vm511_vm3, %v577_v37, %v3954_v36  ;;  %v582_v19 = vrot.slane %v3956_v47, 1  ;;  %v3984_v12 = vrot.slane %v3958_v1, 1  ;;  %2787 = vrot.lane.b32.xlu1 %v2786_v17, %s3486_s4 }
  0x58   : > { %5849 = vst [vmem:[#allocation36_spill] sm:$0xff] %v3958_v1  ;;  %5850 = vst [vmem:[#allocation37_spill] sm:$0xff] %v3965_v9  ;;  %v3974_v50 = vld [vmem:[#allocation2 + $0x178] sm:$0x3]  ;;  %v581_v22 = vsel %vm511_vm3, %v3954_v36, %v580_v38  ;;  %v585_v52 = vrot.slane %v3960_v53, 1  ;;  %v587_v51 = vrot.slane %v3970_v29, 1  ;;  %v4002_v38 = vsel %vm688_vm4, %v694_v25, %v3904_v7 }
  0x59   : > { %5851 = vst [vmem:[#allocation38_spill] sm:$0xff] %v3970_v29  ;;  %5852 = vst [vmem:[#allocation39_spill] sm:$0xff] %v3972_v57  ;;  %v3991_v11 = vrot.slane %v3972_v57, 1  ;;  %v2796_v37 = vpack.i.bf16 %v581_v22, %v3980_v31  ;;  %v3997_v18 = vsel %vm511_vm3, %v582_v19, %v3984_v12  ;;  %v590_v9 = vrot.slane %v3974_v50, 1  ;;  %2792 = vrot.lane.b32.xlu0 %v2791_v43, %s3486_s4 }
  0x5a   : > { %5853 = vst [vmem:[#allocation40_spill] sm:$0xff] %v3980_v31  ;;  %5854 = vst [vmem:[#allocation41_spill] sm:$0xff] %v3984_v12  ;;  %v586_v36 = vsel %vm511_vm3, %v3984_v12, %v585_v52  ;;  %v704_v17 = vrot.slane %v3707_v41, 2  ;;  %v4012_v22 = vrot.slane %v3709_v42, 2  ;;  %v698_v31 = vsel %vm688_vm4, %v3904_v7, %v697_v8 }
  0x5b   : > { %5855 = vst [vmem:[#allocation42_spill] sm:$0xff] %v3991_v11  ;;  %5856 = vst [vmem:[#allocation43_spill] sm:$0xff] %v3997_v18  ;;  %v4008_v35 = vsel %vm511_vm3, %v587_v51, %v3991_v11  ;;  %v2801_v19 = vpack.i.bf16 %v586_v36, %v3997_v18  ;;  %v591_v25 = vsel %vm511_vm3, %v3991_v11, %v590_v9  ;;  %v707_v52 = vrot.slane %v3718_v46, 2 }
  0x5c   : > { %5857 = vst [vmem:[#allocation44_spill] sm:$0xff] %v4008_v35  ;;  %v709_v51 = vrot.slane %v3721_v48, 2  ;;  %v4023_v12 = vrot.slane %v3723_v49, 2  ;;  %2797 = vrot.lane.b32.xlu1 %v2796_v37, %s3486_s4  ;;  %v2806_v42 = vpack.i.bf16 %v591_v25, %v4008_v35  ;;  %v712_v43 = vrot.slane %v3734_v54, 2 }
  0x5d   : > { %v2811_v36 = vpack.i.bf16 %v3943_v0, %v3940_v59  ;;  %v2816_v9 = vpack.i.bf16 %v698_v31, %v4002_v38  ;;  %v5859_v8 = vrot.slane %v3683_v30, 2  ;;  %v5860_v11 = vrot.slane %v3687_v32, 2  ;;  %2802 = vrot.lane.b32.xlu0 %v2801_v19, %s3486_s4 }
  0x5e   : > { %5858 = vst [vmem:[#allocation45_spill] sm:$0xff] %v4023_v12  ;;  %v4044_v54 = vsel %vm688_vm4, %v704_v17, %v4012_v22  ;;  %v708_v59 = vsel %vm688_vm4, %v4012_v22, %v707_v52  ;;  %v714_v0 = vrot.slane %v3736_v55, 2  ;;  %v4050_v31 = vrot.slane %v3738_v56, 2 }
  0x5f   : > { %v4035_v46 = vsel %vm688_vm4, %v5859_v8, %v3916_v16  ;;  %v703_v37 = vsel %vm688_vm4, %v3916_v16, %v5860_v11  ;;  %v4054_v32 = vsel %vm688_vm4, %v709_v51, %v4023_v12  ;;  %v717_v11 = vrot.slane %v3747_v61, 2 }
  0x60   : > { %5861 = vst [vmem:[#allocation46_spill] sm:$0xff] %v4050_v31  ;;  %v719_v19 = vrot.slane %v3749_v62, 2  ;;  %v4059_v25 = vrot.slane %v3760_v3, 2  ;;  %2807 = vrot.lane.b32.xlu1 %v2806_v42, %s3486_s4  ;;  %v713_v17 = vsel %vm688_vm4, %v4023_v12, %v712_v43  ;;  %v722_v52 = vrot.slane %v3762_v4, 2 }
  0x61   : > { %v724_v8 = vrot.slane %v3764_v5, 2  ;;  %v4067_v35 = vrot.slane %v3776_v13, 2  ;;  %v727_v51 = vrot.slane %v3778_v14, 2  ;;  %2812 = vrot.lane.b32.xlu0 %v2811_v36, %s3487_s5  ;;  %v2821_v61 = vpack.i.bf16 %v703_v37, %v4035_v46 }
  0x62   : > { %5862 = vst [vmem:[#allocation47_spill] sm:$0xff] %v4059_v25  ;;  %v2826_v18 = vpack.i.bf16 %v708_v59, %v4044_v54  ;;  %v2831_v42 = vpack.i.bf16 %v713_v17, %v4054_v32  ;;  %v4076_v43 = vsel %vm688_vm4, %v714_v0, %v4050_v31  ;;  %v718_v4 = vsel %vm688_vm4, %v4050_v31, %v717_v11 }
  0x63   : > { %5863 = vst [vmem:[#allocation48_spill] sm:$0xff] %v4067_v35  ;;  %5864 = vst [vmem:[#allocation49_spill] sm:$0xff] %v4076_v43  ;;  %v4082_v12 = vsel %vm688_vm4, %v719_v19, %v4059_v25  ;;  %v723_v14 = vsel %vm688_vm4, %v4059_v25, %v722_v52  ;;  %v4089_v36 = vsel %vm688_vm4, %v724_v8, %v4067_v35  ;;  %v729_v37 = vrot.slane %v3780_v15, 2 }
  0x64   : > { %5865 = vst [vmem:[#allocation50_spill] sm:$0xff] %v4082_v12  ;;  %2817 = vrot.lane.b32.xlu1 %v2816_v9, %s3487_s5  ;;  %5866 = vst [vmem:[#allocation51_spill] sm:$0xff] %v4089_v36  ;;  %v4093_v59 = vrot.slane %v3789_v20, 2  ;;  %v728_v0 = vsel %vm688_vm4, %v4067_v35, %v727_v51  ;;  %v732_v11 = vrot.slane %v3791_v21, 2  ;;  %v734_v19 = vrot.slane %v3802_v26, 2 }
  0x65   : > { %v4100_v9 = vrot.slane %v3804_v27, 2  ;;  %2822 = vrot.lane.b32.xlu0 %v2821_v61, %s3487_s5  ;;  %v737_v17 = vrot.slane %v3817_v44, 2  ;;  %v739_v52 = vrot.slane %v3806_v28, 2  ;;  %v4106_v8 = vrot.slane %v3819_v45, 2 }
  0x66   : > { %5867 = vst [vmem:[#allocation52_spill] sm:$0xff] %v4093_v59  ;;  %v742_v25 = vrot.slane %v3832_v60, 2  ;;  %v744_v51 = vrot.slane %v3901_v2, 2  ;;  %v4111_v21 = vrot.slane %v3908_v6, 2  ;;  %v2836_v35 = vpack.i.bf16 %v718_v4, %v4076_v43 }
  0x67   : > { %5868 = vst [vmem:[#allocation53_spill] sm:$0xff] %v4100_v9  ;;  %v747_v61 = vrot.slane %v3910_v24, 2  ;;  %v2841_v44 = vpack.i.bf16 %v723_v14, %v4082_v12  ;;  %v2846_v31 = vpack.i.bf16 %v728_v0, %v4089_v36  ;;  %v4120_v45 = vsel %vm688_vm4, %v729_v37, %v4093_v59  ;;  %v2453_v36 = vld [vmem:[#allocation2 + $0x40] sm:$0x3]  ;;  %v4160_v12 = vld [vmem:[#allocation2 + $0xe8] sm:$0x3] }
  0x68   : > { %2827 = vrot.lane.b32.xlu1 %v2826_v18, %s3487_s5  ;;  %5869 = vst [vmem:[#allocation54_spill] sm:$0xff] %v4120_v45  ;;  %v733_v60 = vsel %vm688_vm4, %v4093_v59, %v732_v11  ;;  %v4127_v18 = vsel %vm688_vm4, %v734_v19, %v4100_v9  ;;  %v738_v24 = vsel %vm688_vm4, %v4100_v9, %v737_v17  ;;  %v4143_v0 = vrot.slane %v3924_v39, 2 }
  0x69   : > { %2832 = vrot.lane.b32.xlu0 %v2831_v42, %s3487_s5  ;;  %5870 = vst [vmem:[#allocation55_spill] sm:$0xff] %v4127_v18  ;;  %v4133_v4 = vsel %vm688_vm4, %v739_v52, %v4106_v8  ;;  %v743_v14 = vsel %vm688_vm4, %v4106_v8, %v742_v25  ;;  %v4139_v37 = vsel %vm688_vm4, %v744_v51, %v4111_v21  ;;  %v749_v42 = vrot.slane %v3913_v58, 2 }
  0x6a   : > { %v752_v11 = vrot.slane %v3926_v33, 2  ;;  %v748_v19 = vsel %vm688_vm4, %v4111_v21, %v747_v61  ;;  %v754_v17 = vrot.slane %v3933_v10, 2  ;;  %v4151_v25 = vrot.slane %v3935_v63, 2  ;;  %5872 = vst [vmem:[#allocation57_spill] sm:$0xff] %v4160_v12  ;;  %v2477_v10 = vld [vmem:[#allocation2 + $0x100] sm:$0x3] }
  0x6b   : > { %v757_v52 = vrot.slane %v3937_v23, 2  ;;  %v759_v51 = vrot.slane %v3956_v47, 2  ;;  %v4156_v59 = vrot.slane %v3958_v1, 2  ;;  %v2851_v33 = vpack.i.bf16 %v733_v60, %v4120_v45  ;;  %v4169_v1 = vld [vmem:[#allocation2 + $0x100] sm:$0x3] }
  0x6c   : > { %2837 = vrot.lane.b32.xlu1 %v2836_v35, %s3487_s5  ;;  %5871 = vst [vmem:[#allocation56_spill] sm:$0xff] %v4151_v25  ;;  %v2450_v35 = vld [vmem:[#allocation2 + $0x28] sm:$0x3]  ;;  %v2856_v61 = vpack.i.bf16 %v738_v24, %v4127_v18  ;;  %v2861_v9 = vpack.i.bf16 %v743_v14, %v4133_v4  ;;  %v2866_v43 = vpack.i.bf16 %v748_v19, %v4139_v37  ;;  %5873 = vst [vmem:[#allocation58_spill] sm:$0xff] %v4169_v1  ;;  %v2498_v47 = vld [vmem:[#allocation2 + $0x40] sm:$0x3] }
  0x6d   : > { %2842 = vrot.lane.b32.xlu0 %v2841_v44, %s3487_s5  ;;  %v4167_v23 = vsel %vm688_vm4, %v749_v42, %v4143_v0  ;;  %v753_v44 = vsel %vm688_vm4, %v4143_v0, %v752_v11  ;;  %v4176_v60 = vsel %vm688_vm4, %v754_v17, %v4151_v25  ;;  %v758_v24 = vsel %vm688_vm4, %v4151_v25, %v757_v52 }
  0x6e   : > { %v762_v14 = vrot.slane %v3960_v53, 2  ;;  %v4183_v42 = vsel %vm688_vm4, %v759_v51, %v4156_v59  ;;  %v1012_v19 = vrot.slane %v2450_v35, 1  ;;  %v1017_v45 = vrot.slane %v2453_v36, 1 }
  0x6f   : > { %5874 = vst [vmem:[#allocation59_spill] sm:$0xff] %v4183_v42  ;;  %v764_v11 = vrot.slane %v3970_v29, 2  ;;  %v1188_v18 = vrot.slane %v2450_v35, 2  ;;  %v1548_v17 = vrot.slane %v4169_v1, 1  ;;  %v1508_v63 = vrot.slane %v2498_v47, 1  ;;  %v5877_v1 = vld [vmem:[#allocation11_spill] sm:$0xff] }
  0x70   : > { %2847 = vrot.lane.b32.xlu1 %v2846_v31, %s3487_s5  ;;  %v1052_v31 = vrot.slane %v4160_v12, 1  ;;  %v4190_v52 = vrot.slane %v3972_v57, 2  ;;  %v4194_v53 = vsel %vm511_vm3, %v3705_v40, %v1012_v19  ;;  %v4198_v51 = vsel %vm511_vm3, %v3694_v34, %v1017_v45  ;;  %v5875_v12 = vld [vmem:[#allocation25_spill] sm:$0xff]  ;;  %v5878_v29 = vld [vmem:[#allocation10_spill] sm:$0xff]  ;;  %v2525_v57 = vld [vmem:[#allocation2 + $0x118] sm:$0x3] }
  0x71   : > { %2852 = vrot.lane.b32.xlu0 %v2851_v33, %s3487_s5  ;;  %v767_v35 = vrot.slane %v3974_v50, 2  ;;  %v763_v45 = vsel %vm688_vm4, %v4156_v59, %v762_v14  ;;  %v2871_v19 = vpack.i.bf16 %v753_v44, %v4167_v23  ;;  %v5881_v14 = vld [vmem:[#allocation28_spill] sm:$0xff]  ;;  %v1233_v40 = vrot.slane %v2477_v10, 2 }
  0x72   : > { %v4202_v33 = vsel %vm511_vm3, %v5875_v12, %v1052_v31  ;;  %v4216_v12 = vsel %vm688_vm4, %v3904_v7, %v1188_v18  ;;  %v4224_v31 = vsel %vm511_vm3, %v3694_v34, %v1508_v63  ;;  %v1684_v18 = vrot.slane %v2498_v47, 2 }
  0x73   : > { %5876 = vst [vmem:[#allocation25_spill] sm:$0xff] %v4202_v33  ;;  %v1193_v33 = vrot.slane %v2453_v36, 2  ;;  %v2876_v34 = vpack.i.bf16 %v758_v24, %v4176_v60  ;;  %v2881_v63 = vpack.i.bf16 %v763_v45, %v4183_v42  ;;  %v768_v44 = vsel %vm688_vm4, %v4190_v52, %v767_v35  ;;  %v2480_v24 = vld [vmem:[#allocation2 + $0x118] sm:$0x3]  ;;  %v5887_v45 = vld [vmem:[#allocation8_spill] sm:$0xff] }
  0x74   : > { %2857 = vrot.lane.b32.xlu1 %v2856_v61, %s3487_s5  ;;  %v5880_v61 = vld [vmem:[#allocation26_spill] sm:$0xff]  ;;  %v4245_v47 = vsel %vm688_vm4, %v3916_v16, %v1684_v18  ;;  %v1553_v18 = vrot.slane %v2525_v57, 1  ;;  %v5886_v35 = vld [vmem:[#allocation7_spill] sm:$0xff] }
  0x75   : > { %v4220_v50 = vsel %vm511_vm3, %v5880_v61, %v1548_v17  ;;  %2862 = vrot.lane.b32.xlu0 %v2861_v9, %s3487_s5  ;;  %v1057_v17 = vrot.slane %v2477_v10, 1  ;;  %v4239_v9 = vsel %vm688_vm4, %v764_v11, %v4190_v52  ;;  %v4257_v36 = vsel %vm688_vm4, %v3916_v16, %v1193_v33 }
  0x76   : > { %5882 = vst [vmem:[#allocation11_spill] sm:$0xff] %v4239_v9  ;;  %5884 = vst [vmem:[#allocation26_spill] sm:$0xff] %v4257_v36  ;;  %v2886_v16 = vpack.i.bf16 %v768_v44, %v4239_v9  ;;  %v1729_v33 = vrot.slane %v2525_v57, 2  ;;  %v2891_v25 = vpack.i.bf16 %v5887_v45, %v5886_v35  ;;  %v5889_v57 = vld [vmem:[#allocation6_spill] sm:$0xff]  ;;  %v5890_v36 = vld [vmem:[#allocation12_spill] sm:$0xff] }
  0x77   : > { %v4249_v10 = vsel %vm511_vm3, %v5880_v61, %v1057_v17  ;;  %v2456_v61 = vld [vmem:[#allocation2 + $0x58] sm:$0x3]  ;;  %v5885_v17 = vld [vmem:[#allocation29_spill] sm:$0xff]  ;;  %v4285_v44 = vpack.i.bf16 %v5889_v57, %v3683_v30  ;;  %v1238_v57 = vrot.slane %v2480_v24, 2 }
  0x78   : > { %2867 = vrot.lane.b32.xlu1 %v2866_v43, %s3487_s5  ;;  %v4253_v43 = vsel %vm688_vm4, %v4106_v8, %v1233_v40  ;;  %v4272_v11 = vsel %vm511_vm3, %v5885_v17, %v1553_v18  ;;  %v1022_v7 = vrot.slane %v2456_v61, 1  ;;  %v1198_v40 = vrot.slane %v2456_v61, 2 }
  0x79   : > { %5883 = vst [vmem:[#allocation10_spill] sm:$0xff] %v4253_v43  ;;  %2872 = vrot.lane.b32.xlu0 %v2871_v19, %s3487_s5  ;;  %v1062_v19 = vrot.slane %v2480_v24, 1  ;;  %v5888_v43 = vld [vmem:[#allocation33_spill] sm:$0xff]  ;;  %v2921_v61 = vpack.i.bf16 %v3776_v13, %v3764_v5 }
  0x7a   : > { %v4295_v35 = vsel %vm511_vm3, %v5890_v36, %v1022_v7  ;;  %v4307_v7 = vsel %vm688_vm4, %v4111_v21, %v1238_v57  ;;  %v4311_v36 = vsel %vm688_vm4, %v4012_v22, %v1198_v40  ;;  %v2916_v40 = vpack.i.bf16 %v3760_v3, %v3749_v62  ;;  %v5893_v57 = vld [vmem:[#allocation30_spill] sm:$0xff]  ;;  %v5895_v5 = vld [vmem:[#allocation45_spill] sm:$0xff] }
  0x7b   : > { %v2926_v62 = vpack.i.bf16 %v3789_v20, %v3780_v15  ;;  %v2486_v15 = vld [vmem:[#allocation2 + $0x148] sm:$0x3] }
  0x7c   : > { %2877 = vrot.lane.b32.xlu1 %v2876_v34, %s3487_s5  ;;  %v4281_v34 = vsel %vm688_vm4, %v4111_v21, %v1729_v33  ;;  %v5891_v33 = vld [vmem:[#allocation14_spill] sm:$0xff]  ;;  %v2911_v21 = vpack.i.bf16 %v3738_v56, %v3736_v55  ;;  %v5896_v20 = vld [vmem:[#allocation21_spill] sm:$0xff] }
  0x7d   : > { %2882 = vrot.lane.b32.xlu0 %v2881_v63, %s3487_s5  ;;  %v3061_v18 = vpack.i.bf16 %v4281_v34, %v4139_v37  ;;  %v4291_v63 = vsel %vm511_vm3, %v5885_v17, %v1062_v19  ;;  %v3076_v30 = vpack.i.bf16 %v4295_v35, %v5891_v33  ;;  %v5892_v19 = vld [vmem:[#allocation9_spill] sm:$0xff]  ;;  %v2504_v34 = vld [vmem:[#allocation2 + $0x70] sm:$0x3]  ;;  %v5941_v33 = vpack.i.bf16 %v4311_v36, %v4044_v54 }
  0x7e   : > { %v3071_v45 = vpack.i.bf16 %v4291_v63, %v5888_v43  ;;  %v2901_v17 = vpack.i.bf16 %v5892_v19, %v3707_v41  ;;  %v2906_v41 = vpack.i.bf16 %v3723_v49, %v3721_v48  ;;  %v4333_v48 = vld [vmem:[#allocation2 + $0x70] sm:$0x3]  ;;  %v5894_v49 = vld [vmem:[#allocation37_spill] sm:$0xff] }
  0x80   : > { %2887 = vrot.lane.b32.xlu1 %v2886_v16, %s3487_s5  ;;  %v3081_v16 = vpack.i.bf16 %v4307_v7, %v4139_v37  ;;  %s5655_s5 = scalar_lea.hbm %s5705_s3, %s2583_s27 }
  0x81   : > { %2892 = vrot.lane.b32.xlu0 %v2891_v25, %s3488_s6  ;;  %v2483_v25 = vld [vmem:[#allocation2 + $0x130] sm:$0x3] }
  0x82   : > { %v1067_v22 = vrot.slane %v2483_v25, 1  ;;  %v1243_v56 = vrot.slane %v2483_v25, 2  ;;  %v5905_v25 = vld [vmem:[#allocation49_spill] sm:$0xff] }
  0x84   : > { %2897 = vrot.lane.b32.xlu1 %v4285_v44, %s3488_s6  ;;  %v4331_v19 = vsel %vm511_vm3, %v5893_v57, %v1067_v22  ;;  %v4344_v3 = vsel %vm688_vm4, %v4143_v0, %v1243_v56  ;;  %v2936_v0 = vpack.i.bf16 %v5896_v20, %v3806_v28  ;;  %v1072_v22 = vrot.slane %v2486_v15, 1  ;;  %v5897_v57 = vld [vmem:[#allocation34_spill] sm:$0xff]  ;;  %v4374_v28 = vld [vmem:[#allocation2 + $0x88] sm:$0x3] }
  0x85   : > { %2902 = vrot.lane.b32.xlu0 %v2901_v17, %s3488_s6  ;;  %v1203_v17 = vrot.slane %v4333_v48, 2 }
  0x86   : > { %v4367_v56 = vsel %vm511_vm3, %v5897_v57, %v1072_v22  ;;  %v5902_v22 = vld [vmem:[#allocation46_spill] sm:$0xff] }
  0x87   : > { %v4348_v13 = vsel %vm688_vm4, %v5895_v5, %v1203_v17  ;;  %v1248_v17 = vrot.slane %v2486_v15, 2  ;;  %v5904_v15 = vld [vmem:[#allocation36_spill] sm:$0xff] }
  0x88   : > { %2907 = vrot.lane.b32.xlu1 %v2906_v41, %s3488_s6  ;;  %v5909_v41 = vld [vmem:[#allocation53_spill] sm:$0xff] }
  0x89   : > { %2912 = vrot.lane.b32.xlu0 %v2911_v21, %s3488_s6  ;;  %v2931_v21 = vpack.i.bf16 %v3804_v27, %v3802_v26  ;;  %v2946_v26 = vpack.i.bf16 %v3924_v39, %v3913_v58  ;;  %v5898_v27 = vld [vmem:[#allocation40_spill] sm:$0xff]  ;;  %v5903_v39 = vld [vmem:[#allocation35_spill] sm:$0xff] }
  0x8a   : > { %v2956_v57 = vpack.i.bf16 %v5904_v15, %v5903_v39  ;;  %v4402_v39 = vld [vmem:[#allocation2 + $0x160] sm:$0x3] }
  0x8b   : > { %v1253_v15 = vrot.slane %v4402_v39, 2 }
  0x8c   : > { %2917 = vrot.lane.b32.xlu1 %v2916_v40, %s3488_s6  ;;  %v4363_v40 = vpack.i.bf16 %v3908_v6, %v3901_v2  ;;  %v5899_v2 = vld [vmem:[#allocation31_spill] sm:$0xff]  ;;  %v5900_v6 = vld [vmem:[#allocation32_spill] sm:$0xff] }
  0x8d   : > { %2922 = vrot.lane.b32.xlu0 %v2921_v61, %s3488_s6  ;;  %v2951_v5 = vpack.i.bf16 %v5900_v6, %v5899_v2  ;;  %v2493_v2 = vld [vmem:[#allocation2 + $0x180] sm:$0xff]  ;;  %v2494_v6 = vld [vmem:[#allocation2 + $0x188] sm:$0xff] }
  0x90   : > { %2927 = vrot.lane.b32.xlu1 %v2926_v62, %s3488_s6  ;;  %v1208_v62 = vrot.slane %v4374_v28, 2 }
  0x91   : > { %2932 = vrot.lane.b32.xlu0 %v2931_v21, %s3488_s6  ;;  %v5901_v21 = vld [vmem:[#allocation56_spill] sm:$0xff] }
  0x92   : > { %v4383_v20 = vsel %vm688_vm4, %v5901_v21, %v1248_v17  ;;  %v4387_v58 = vsel %vm688_vm4, %v5902_v22, %v1208_v62  ;;  %v5906_v17 = vld [vmem:[#allocation38_spill] sm:$0xff]  ;;  %v5907_v21 = vld [vmem:[#allocation39_spill] sm:$0xff]  ;;  %v2966_v62 = vpack.i.bf16 %v2494_v6, %v2493_v2 }
  0x93   : > { %v2961_v55 = vpack.i.bf16 %v5907_v21, %v5906_v17  ;;  %v5912_v17 = vpack.i.bf16 %v4198_v51, %v5878_v29  ;;  %v5913_v21 = vld [vmem:[#allocation55_spill] sm:$0xff] }
  0x94   : > { %2937 = vrot.lane.b32.xlu1 %v2936_v0, %s3488_s6 }
  0x95   : > { %2942 = vrot.lane.b32.xlu0 %v4363_v40, %s3488_s6 }
  0x98   : > { %2947 = vrot.lane.b32.xlu1 %v2946_v26, %s3488_s6  ;;  %v5908_v26 = vld [vmem:[#allocation57_spill] sm:$0xff] }
  0x99   : > { %2952 = vrot.lane.b32.xlu0 %v2951_v5, %s3488_s6  ;;  %v1228_v22 = vrot.slane %v5908_v26, 2  ;;  %v4410_v5 = vsel %vm688_vm4, %v4156_v59, %v1253_v15  ;;  %v5915_v59 = vld [vmem:[#allocation27_spill] sm:$0xff]  ;;  %v5918_v15 = vpack.i.bf16 %v4216_v12, %v4002_v38  ;;  %v1085_v38 = vrot.slane %v2494_v6, 1 }
  0x9a   : > { %5910 = vst [vmem:[#allocation28_spill] sm:$0xff] %v4410_v5  ;;  %v1084_v12 = vrot.slane %v2493_v2, 1 }
  0x9b   : > { %v1229_v61 = vsel %vm688_vm4, %v5909_v41, %v1228_v22  ;;  %v4429_v22 = vld [vmem:[#allocation2 + $0x178] sm:$0x3] }
  0x9c   : > { %2957 = vrot.lane.b32.xlu1 %v2956_v57, %s3488_s6  ;;  %v5911_v57 = vpack.i.bf16 %v4194_v53, %v5877_v1  ;;  %v2986_v41 = vpack.i.bf16 %v1229_v61, %v5913_v21  ;;  %v5917_v1 = vld [vmem:[#allocation58_spill] sm:$0xff]  ;;  %v1258_v51 = vrot.slane %v4429_v22, 2 }
  0x9d   : > { %2962 = vrot.lane.b32.xlu0 %v2961_v55, %s3488_s6  ;;  %v1724_v53 = vrot.slane %v5917_v1, 2  ;;  %v2495_v21 = vld [vmem:[#allocation2 + $0x190] sm:$0x3] }
  0x9e   : > { %v4439_v61 = vsel %vm688_vm4, %v4190_v52, %v1258_v51  ;;  %v2500_v1 = vld [vmem:[#allocation2 + $0x50] sm:$0xff] }
  0x9f   : > { %5919 = vst [vmem:[#allocation29_spill] sm:$0xff] %v4439_v61 }
  0xa0   : > { %2967 = vrot.lane.b32.xlu1 %v2966_v62, %s3488_s6  ;;  %v5914_v62 = vld [vmem:[#allocation25_spill] sm:$0xff]  ;;  %s2344_s6 = scalar_lea.sflag [#allocation4], %s175_s23 }
  0xa1   : > { %2972 = vrot.lane.b32.xlu0 %v5911_v57, %s3489_s7  ;;  %v5916_v26 = vpack.i.bf16 %v5914_v62, %v5915_v59  ;;  %v1725_v57 = vsel %vm688_vm4, %v4106_v8, %v1724_v53  ;;  %v1260_v62 = vrot.slane %v2493_v2, 2  ;;  %v5921_v8 = vpack.i.bf16 %v4224_v31, %v5878_v29  ;;  %v4456_v59 = vpop.permute.xlu0 %2732  ;;  %v2501_v29 = vld [vmem:[#allocation2 + $0x58] sm:$0x3] }
  0xa2   : > { %v3016_v52 = vpack.i.bf16 %v1725_v57, %v4133_v4 }
  0xa4   : > { %2977 = vrot.lane.b32.xlu1 %v5912_v17, %s3489_s7 }
  0xa5   : > { %2982 = vrot.lane.b32.xlu0 %v5916_v26, %s3489_s7  ;;  %v5923_v26 = vpack.i.bf16 %v4245_v47, %v4035_v46  ;;  %v5928_v47 = vpack.i.bf16 %v4249_v10, %v5881_v14 }
  0xa8   : > { %2987 = vrot.lane.b32.xlu1 %v2986_v41, %s3490_s8  ;;  %v1261_v41 = vrot.slane %v2494_v6, 2  ;;  %v2499_v6 = vld [vmem:[#allocation2 + $0x48] sm:$0xff] }
  0xa9   : > { %2992 = vrot.lane.b32.xlu0 %v5918_v15, %s3490_s8  ;;  %v1263_v15 = vrot.slane %v2495_v21, 2 }
  0xaa   : > { %v4472_v53 = vsel %vm688_vm4, %v1260_v62, %v1261_v41  ;;  %v5930_v62 = vld [vmem:[#allocation10_spill] sm:$0xff] }
  0xab   : > { %5926 = vst [vmem:[#allocation6_spill] sm:$0xff] %v4472_v53 }
  0xac   : > { %2997 = vrot.lane.b32.xlu1 %v2936_v0, %s3491_s9  ;;  %v5920_v0 = vpack.i.bf16 %v4220_v50, %v5881_v14  ;;  %v1087_v50 = vrot.slane %v2495_v21, 1  ;;  %v5931_v21 = vpack.i.bf16 %v5930_v62, %v4133_v4  ;;  %v5933_v14 = vld [vmem:[#allocation26_spill] sm:$0xff]  ;;  %v1689_v62 = vrot.slane %v2501_v29, 2 }
  0xad   : > { %3002 = vrot.lane.b32.xlu0 %v4285_v44, %s3491_s9  ;;  %v4460_v44 = vsel %vm511_vm3, %v1084_v12, %v1085_v38  ;;  %v4483_v12 = vsel %vm688_vm4, %v1261_v41, %v1263_v15  ;;  %v5934_v10 = vpack.i.bf16 %v5933_v14, %v4035_v46  ;;  %v1687_v41 = vrot.slane %v2500_v1, 2  ;;  %v2528_v14 = vld [vmem:[#allocation2 + $0x130] sm:$0x3] }
  0xae   : > { %5922 = vst [vmem:[#allocation7_spill] sm:$0xff] %v4460_v44  ;;  %v4469_v31 = vsel %vm511_vm3, %v1085_v38, %v1087_v50  ;;  %5929 = vst [vmem:[#allocation14_spill] sm:$0xff] %v4483_v12  ;;  %v1510_v38 = vrot.slane %v2499_v6, 1  ;;  %v3046_v15 = vpack.i.bf16 %v2500_v1, %v2499_v6  ;;  %v1734_v24 = vrot.slane %v2528_v14, 2 }
  0xaf   : > { %5925 = vst [vmem:[#allocation33_spill] sm:$0xff] %v4469_v31  ;;  %v1032_v12 = vrot.slane %v4374_v28, 1 }
  0xb0   : > { %3007 = vrot.lane.b32.xlu1 %v5920_v0, %s3492_s10  ;;  %v1511_v0 = vrot.slane %v2500_v1, 1  ;;  %v1690_v1 = vsel %vm688_vm4, %v1687_v41, %v1689_v62 }
  0xb1   : > { %3012 = vrot.lane.b32.xlu0 %v5921_v8, %s3492_s10 }
  0xb2   : > { %v4466_v2 = vpop.permute.xlu1 %2742  ;;  %v1512_v51 = vsel %vm511_vm3, %v1510_v38, %v1511_v0 }
  0xb3   : > { %5924 = vst [vmem:[#allocation8_spill] sm:$0xff] %v4466_v2  ;;  %v2510_v2 = vld [vmem:[#allocation2 + $0xa0] sm:$0x3] }
  0xb4   : > { %3017 = vrot.lane.b32.xlu1 %v3016_v52, %s3493_s11  ;;  %v1513_v52 = vrot.slane %v2501_v29, 1  ;;  %v1528_v31 = vrot.slane %v2510_v2, 1 }
  0xb5   : > { %3022 = vrot.lane.b32.xlu0 %v5923_v26, %s3493_s11  ;;  %v4476_v57 = vpop.permute.xlu0 %2737 }
  0xb6   : > { %5927 = vst [vmem:[#allocation12_spill] sm:$0xff] %v4476_v57  ;;  %v4489_v8 = vpop.permute.xlu1 %2747  ;;  %v1514_v4 = vsel %vm511_vm3, %v1511_v0, %v1513_v52  ;;  %v2527_v52 = vld [vmem:[#allocation2 + $0x128] sm:$0xff] }
  0xb7   : > { %5932 = vst [vmem:[#allocation9_spill] sm:$0xff] %v4489_v8  ;;  %v3056_v17 = vpack.i.bf16 %v1514_v4, %v1512_v51  ;;  %v1732_v63 = vrot.slane %v2527_v52, 2 }
  0xb8   : > { %3027 = vrot.lane.b32.xlu1 %v5928_v47, %s3489_s7  ;;  %v1686_v47 = vrot.slane %v2499_v6, 2  ;;  %v5935_v6 = vpack.i.bf16 %v4272_v11, %v5888_v43  ;;  %v2526_v11 = vld [vmem:[#allocation2 + $0x120] sm:$0xff] }
  0xb9   : > { %3032 = vrot.lane.b32.xlu0 %v5931_v21, %s3490_s8  ;;  %v4493_v26 = vpop.permute.xlu0 %2752 }
  0xba   : > { %v4503_v21 = vpop.permute.xlu1 %2757  ;;  %v1688_v46 = vsel %vm688_vm4, %v1686_v47, %v1687_v41  ;;  %v2503_v41 = vld [vmem:[#allocation2 + $0x68] sm:$0xff]  ;;  %v1558_v47 = vrot.slane %v2528_v14, 1 }
  0xbb   : > { %v1516_v62 = vrot.slane %v2503_v41, 1 }
  0xbc   : > { %3037 = vrot.lane.b32.xlu1 %v5934_v10, %s3490_s8  ;;  %v2502_v10 = vld [vmem:[#allocation2 + $0x60] sm:$0xff] }
  0xbd   : > { %3042 = vrot.lane.b32.xlu0 %v4363_v40, %s3491_s9  ;;  %v4505_v50 = vpop.permute.xlu0 %2762  ;;  %v3066_v40 = vpack.i.bf16 %v1690_v1, %v1688_v46  ;;  %v1515_v46 = vrot.slane %v2502_v10, 1  ;;  %v1518_v1 = vrot.slane %v2504_v34, 1  ;;  %v3096_v37 = vpack.i.bf16 %v2503_v41, %v2502_v10 }
  0xbe   : > { %v4514_v29 = vpop.permute.xlu1 %2767  ;;  %v1691_v7 = vrot.slane %v2502_v10, 2 }
  0xc0   : > { %3047 = vrot.lane.b32.xlu1 %v3046_v15, %s3491_s9  ;;  %v1555_v15 = vrot.slane %v2526_v11, 1 }
  0xc1   : > { %3052 = vrot.lane.b32.xlu0 %v5935_v6, %s3492_s10  ;;  %v1731_v6 = vrot.slane %v2526_v11, 2 }
  0xc2   : > { %v4516_v0 = vpop.permute.xlu0 %2772  ;;  %v4523_v51 = vpop.permute.xlu1 %2777 }
  0xc3   : > { %5936 = vst [vmem:[#allocation30_spill] sm:$0xff] %v4516_v0  ;;  %5937 = vst [vmem:[#allocation37_spill] sm:$0xff] %v4523_v51 }
  0xc4   : > { %3057 = vrot.lane.b32.xlu1 %v3056_v17, %s3492_s10 }
  0xc5   : > { %3062 = vrot.lane.b32.xlu0 %v3061_v18, %s3493_s11  ;;  %v1556_v18 = vrot.slane %v2527_v52, 1 }
  0xc6   : > { %v4525_v38 = vpop.permute.xlu0 %2782 }
  0xc7   : > { %5938 = vst [vmem:[#allocation45_spill] sm:$0xff] %v4525_v38  ;;  %v1559_v55 = vsel %vm511_vm3, %v1556_v18, %v1558_v47  ;;  %v1735_v47 = vsel %vm688_vm4, %v1732_v63, %v1734_v24 }
  0xc8   : > { %3067 = vrot.lane.b32.xlu1 %v3066_v40, %s3493_s11  ;;  %v1557_v40 = vsel %vm511_vm3, %v1555_v15, %v1556_v18  ;;  %v1733_v18 = vsel %vm688_vm4, %v1731_v6, %v1732_v63  ;;  %v2531_v63 = vld [vmem:[#allocation2 + $0x148] sm:$0x3] }
  0xc9   : > { %3072 = vrot.lane.b32.xlu0 %v3071_v45, %s3489_s7  ;;  %v4532_v17 = vpop.permute.xlu1 %2787  ;;  %v3091_v45 = vpack.i.bf16 %v2527_v52, %v2526_v11  ;;  %v1519_v52 = vsel %vm511_vm3, %v1516_v62, %v1518_v1  ;;  %v1694_v11 = vrot.slane %v2504_v34, 2  ;;  %v3101_v14 = vpack.i.bf16 %v1559_v55, %v1557_v40 }
  0xca   : > { %5939 = vst [vmem:[#allocation21_spill] sm:$0xff] %v4532_v17  ;;  %v3111_v55 = vpack.i.bf16 %v1735_v47, %v1733_v18  ;;  %v5948_v18 = vld [vmem:[#allocation15_spill] sm:$0xff] }
  0xcb   : > { %v4534_v4 = vpop.permute.xlu0 %2792 }
  0xcc   : > { %3077 = vrot.lane.b32.xlu1 %v3076_v30, %s3489_s7  ;;  %v1692_v30 = vrot.slane %v2503_v41, 2  ;;  %v1027_v41 = vrot.slane %v4333_v48, 1 }
  0xcd   : > { %3082 = vrot.lane.b32.xlu0 %v3081_v16, %s3490_s8  ;;  %v1517_v16 = vsel %vm511_vm3, %v1515_v46, %v1516_v62  ;;  %v4570_v62 = vld [vmem:[#allocation2 + $0x138] sm:$0xff]  ;;  %v4572_v46 = vld [vmem:[#allocation2 + $0x140] sm:$0xff] }
  0xce   : > { %v4544_v43 = vpop.permute.xlu1 %2797  ;;  %v3106_v54 = vpack.i.bf16 %v1519_v52, %v1517_v16  ;;  %v1693_v36 = vsel %vm688_vm4, %v1691_v7, %v1692_v30  ;;  %v1695_v10 = vsel %vm688_vm4, %v1692_v30, %v1694_v11  ;;  %v1561_v48 = vrot.slane %v4572_v46, 1  ;;  %v4588_v16 = vld [vmem:[#allocation2 + $0x78] sm:$0xff]  ;;  %v2507_v11 = vld [vmem:[#allocation2 + $0x88] sm:$0x3] }
  0xcf   : > { %v4548_v35 = vpop.permute.xlu0 %2802  ;;  %v3116_v1 = vpack.i.bf16 %v1695_v10, %v1693_v36  ;;  %v1560_v40 = vrot.slane %v4570_v62, 1  ;;  %v1736_v7 = vrot.slane %v4570_v62, 2  ;;  %v1563_v52 = vrot.slane %v2531_v63, 1 }
  0xd0   : > { %5940 = vst [vmem:[#allocation34_spill] sm:$0xff] %v4548_v35  ;;  %3087 = vrot.lane.b32.xlu1 %v5941_v33, %s3490_s8  ;;  %v4581_v33 = vld [vmem:[#allocation2 + $0x80] sm:$0xff]  ;;  %v1699_v38 = vrot.slane %v2507_v11, 2 }
  0xd1   : > { %3092 = vrot.lane.b32.xlu0 %v3091_v45, %s3491_s9  ;;  %v5946_v45 = vld [vmem:[#allocation13_spill] sm:$0xff]  ;;  %v1521_v36 = vrot.slane %v4581_v33, 1  ;;  %v1697_v10 = vrot.slane %v4581_v33, 2  ;;  %v1564_v53 = vsel %vm511_vm3, %v1561_v48, %v1563_v52 }
  0xd2   : > { %v4557_v15 = vpop.permute.xlu1 %2807  ;;  %v1028_v6 = vsel %vm511_vm3, %v5946_v45, %v1027_v41  ;;  %v4598_v41 = vld [vmem:[#allocation2 + $0x158] sm:$0xff]  ;;  %v1520_v45 = vrot.slane %v4588_v16, 1 }
  0xd3   : > { %5942 = vst [vmem:[#allocation40_spill] sm:$0xff] %v4557_v15  ;;  %v4561_v17 = vpop.permute.xlu0 %2812  ;;  %v3126_v47 = vpack.i.bf16 %v1028_v6, %v5948_v18  ;;  %v4607_v6 = vld [vmem:[#allocation2 + $0x150] sm:$0xff]  ;;  %v4609_v18 = vld [vmem:[#allocation2 + $0x98] sm:$0xff]  ;;  %v1566_v44 = vrot.slane %v4598_v41, 1  ;;  %v4649_v42 = vsel %vm688_vm4, %v1697_v10, %v1699_v38 }
  0xd4   : > { %5943 = vst [vmem:[#allocation31_spill] sm:$0xff] %v4561_v17  ;;  %3097 = vrot.lane.b32.xlu1 %v3096_v37, %s3491_s9  ;;  %v1737_v37 = vrot.slane %v4572_v46, 2  ;;  %v1522_v51 = vsel %vm511_vm3, %v1520_v45, %v1521_v36  ;;  %v1704_v17 = vrot.slane %v2510_v2, 2 }
  0xd5   : > { %3102 = vrot.lane.b32.xlu0 %v3101_v14, %s3492_s10 }
  0xd6   : > { %v4568_v34 = vpop.permute.xlu1 %2817 }
  0xd7   : > { %5944 = vst [vmem:[#allocation32_spill] sm:$0xff] %v4568_v34  ;;  %v4574_v24 = vpop.permute.xlu0 %2822  ;;  %v5950_v34 = vpack.i.bf16 %v4344_v3, %v4167_v23  ;;  %v2465_v23 = vld [vmem:[#allocation2 + $0xa0] sm:$0x3] }
  0xd8   : > { %5945 = vst [vmem:[#allocation56_spill] sm:$0xff] %v4574_v24  ;;  %3107 = vrot.lane.b32.xlu1 %v3106_v54, %s3492_s10  ;;  %v3141_v54 = vpack.i.bf16 %v4572_v46, %v4570_v62  ;;  %v2534_v62 = vld [vmem:[#allocation2 + $0x160] sm:$0x3]  ;;  %v5949_v46 = vpack.i.bf16 %v4331_v19, %v5894_v49  ;;  %v4618_v24 = vsel %vm688_vm4, %v1736_v7, %v1737_v37  ;;  %v1742_v19 = vrot.slane %v4598_v41, 2 }
  0xd9   : > { %3112 = vrot.lane.b32.xlu0 %v3111_v55, %s3493_s11  ;;  %v3146_v55 = vpack.i.bf16 %v4581_v33, %v4588_v16  ;;  %v1523_v33 = vrot.slane %v2507_v11, 1  ;;  %v1565_v7 = vrot.slane %v4607_v6, 1  ;;  %v1526_v11 = vrot.slane %v4609_v18, 1 }
  0xda   : > { %v4584_v30 = vpop.permute.xlu1 %2827  ;;  %v1568_v52 = vrot.slane %v2534_v62, 1  ;;  %v1744_v61 = vrot.slane %v2534_v62, 2 }
  0xdb   : > { %5947 = vst [vmem:[#allocation46_spill] sm:$0xff] %v4584_v30  ;;  %v4590_v14 = vpop.permute.xlu0 %2832  ;;  %v1696_v30 = vrot.slane %v4588_v16, 2  ;;  %v1739_v16 = vrot.slane %v2531_v63, 2  ;;  %v1741_v63 = vrot.slane %v4607_v6, 2  ;;  %v1524_v57 = vsel %vm511_vm3, %v1521_v36, %v1523_v33 }
  0xdc   : > { %3117 = vrot.lane.b32.xlu1 %v3116_v1, %s3493_s11  ;;  %v4605_v1 = vsel %vm511_vm3, %v1560_v40, %v1561_v48  ;;  %v4620_v40 = vld [vmem:[#allocation2 + $0x90] sm:$0xff]  ;;  %v4668_v38 = vsel %vm511_vm3, %v1566_v44, %v1568_v52  ;;  %v3156_v62 = vpack.i.bf16 %v1524_v57, %v1522_v51  ;;  %v1213_v52 = vrot.slane %v2465_v23, 2 }
  0xdd   : > { %3122 = vrot.lane.b32.xlu0 %v5949_v46, %s3489_s7  ;;  %v1702_v46 = vrot.slane %v4609_v18, 2  ;;  %v1525_v48 = vrot.slane %v4620_v40, 1  ;;  %v1701_v28 = vrot.slane %v4620_v40, 2  ;;  %v4643_v9 = vsel %vm688_vm4, %v1696_v30, %v1697_v10  ;;  %v5953_v30 = vld [vmem:[#allocation16_spill] sm:$0xff]  ;;  %v4703_v57 = vld [vmem:[#allocation2 + $0x170] sm:$0xff] }
  0xde   : > { %v4615_v8 = vpop.permute.xlu1 %2837  ;;  %v3151_v0 = vpack.i.bf16 %v1564_v53, %v4605_v1  ;;  %v1740_v15 = vsel %vm688_vm4, %v1737_v37, %v1739_v16  ;;  %v4659_v2 = vsel %vm511_vm3, %v5953_v30, %v1032_v12  ;;  %v4662_v53 = vsel %vm511_vm3, %v1565_v7, %v1566_v44  ;;  %v2537_v7 = vld [vmem:[#allocation2 + $0x178] sm:$0x3] }
  0xdf   : > { %v4626_v49 = vpop.permute.xlu0 %2842  ;;  %v4665_v37 = vsel %vm688_vm4, %v1741_v63, %v1742_v19  ;;  %v4671_v36 = vsel %vm511_vm3, %v1525_v48, %v1526_v11  ;;  %v4674_v10 = vsel %vm511_vm3, %v1526_v11, %v1528_v31  ;;  %v4683_v12 = vsel %vm688_vm4, %v1742_v19, %v1744_v61  ;;  %v4701_v19 = vld [vmem:[#allocation2 + $0x168] sm:$0xff] }
  0xe0   : > { %3127 = vrot.lane.b32.xlu1 %v3126_v47, %s3489_s7  ;;  %v4686_v45 = vsel %vm688_vm4, %v1702_v46, %v1704_v17  ;;  %v1077_v44 = vrot.slane %v4402_v39, 1  ;;  %v1037_v1 = vrot.slane %v2465_v23, 1  ;;  %v3161_v31 = vpack.i.bf16 %v1740_v15, %v4618_v24  ;;  %v4713_v24 = vld [vmem:[#allocation2 + $0xa8] sm:$0xff]  ;;  %v2468_v15 = vld [vmem:[#allocation2 + $0xb8] sm:$0x3] }
  0xe1   : > { %3132 = vrot.lane.b32.xlu0 %v5950_v34, %s3490_s8  ;;  %v5952_v34 = vpack.i.bf16 %v4348_v13, %v4054_v32  ;;  %v4677_v32 = vsel %vm688_vm4, %v1701_v28, %v1702_v46  ;;  %v3166_v33 = vpack.i.bf16 %v4649_v42, %v4643_v9  ;;  %v5958_v11 = vld [vmem:[#allocation41_spill] sm:$0xff]  ;;  %v1571_v30 = vrot.slane %v4703_v57, 1 }
  0xe2   : > { %v4639_v47 = vpop.permute.xlu1 %2847  ;;  %v4722_v46 = vsel %vm511_vm3, %v5958_v11, %v1077_v44  ;;  %v5959_v48 = vld [vmem:[#allocation17_spill] sm:$0xff]  ;;  %v1530_v23 = vrot.slane %v4713_v24, 1  ;;  %v1573_v11 = vrot.slane %v2537_v7, 1  ;;  %v1749_v42 = vrot.slane %v2537_v7, 2 }
  0xe3   : > { %v4651_v3 = vpop.permute.xlu0 %2852  ;;  %v4726_v28 = vsel %vm511_vm3, %v5959_v48, %v1037_v1  ;;  %v1706_v48 = vrot.slane %v4713_v24, 2  ;;  %v2764_v7 = vunpack.i.l.bf16 %v4505_v50 }
  0xe4   : > { %5951 = vst [vmem:[#allocation35_spill] sm:$0xff] %v4651_v3  ;;  %3137 = vrot.lane.b32.xlu1 %v5952_v34, %s3490_s8  ;;  %v2513_v34 = vld [vmem:[#allocation2 + $0xb8] sm:$0x3]  ;;  %v5962_v3 = vld [vmem:[#allocation20_spill] sm:$0xff] }
  0xe5   : > { %3142 = vrot.lane.b32.xlu0 %v3141_v54, %s3491_s9  ;;  %v5956_v54 = vld [vmem:[#allocation18_spill] sm:$0xff]  ;;  %v1533_v9 = vrot.slane %v2513_v34, 1  ;;  %v1709_v39 = vrot.slane %v2513_v34, 2  ;;  %v1218_v34 = vrot.slane %v2468_v15, 2 }
  0xe6   : > { %v4680_v13 = vpop.permute.xlu1 %2857  ;;  %v3176_v61 = vpack.i.bf16 %v4659_v2, %v5956_v54  ;;  %v1747_v2 = vrot.slane %v4703_v57, 2  ;;  %v1570_v54 = vrot.slane %v4701_v19, 1 }
  0xe7   : > { %5954 = vst [vmem:[#allocation36_spill] sm:$0xff] %v4680_v13  ;;  %v4692_v16 = vpop.permute.xlu0 %2862  ;;  %v1042_v13 = vrot.slane %v2468_v15, 1 }
  0xe8   : > { %5955 = vst [vmem:[#allocation49_spill] sm:$0xff] %v4692_v16  ;;  %3147 = vrot.lane.b32.xlu1 %v3146_v55, %s3491_s9  ;;  %v4715_v55 = vld [vmem:[#allocation2 + $0xb0] sm:$0xff]  ;;  %v4757_v16 = vsel %vm511_vm3, %v1570_v54, %v1571_v30  ;;  %v4772_v15 = vsel %vm688_vm4, %v1747_v2, %v1749_v42 }
  0xe9   : > { %3152 = vrot.lane.b32.xlu0 %v3151_v0, %s3492_s10  ;;  %v1746_v0 = vrot.slane %v4701_v19, 2  ;;  %v1531_v44 = vrot.slane %v4715_v55, 1  ;;  %v1707_v1 = vrot.slane %v4715_v55, 2 }
  0xea   : > { %v4718_v63 = vpop.permute.xlu1 %2867 }
  0xeb   : > { %5957 = vst [vmem:[#allocation38_spill] sm:$0xff] %v4718_v63  ;;  %v4732_v51 = vpop.permute.xlu0 %2872  ;;  %v5961_v63 = vld [vmem:[#allocation43_spill] sm:$0xff]  ;;  %v4763_v5 = vsel %vm511_vm3, %v1530_v23, %v1531_v44  ;;  %v4778_v54 = vsel %vm688_vm4, %v1707_v1, %v1709_v39  ;;  %v5971_v39 = vld [vmem:[#allocation50_spill] sm:$0xff] }
  0xec   : > { %5960 = vst [vmem:[#allocation39_spill] sm:$0xff] %v4732_v51  ;;  %3157 = vrot.lane.b32.xlu1 %v3156_v62, %s3492_s10  ;;  %v1082_v62 = vrot.slane %v4429_v22, 1  ;;  %v5963_v51 = vld [vmem:[#allocation47_spill] sm:$0xff]  ;;  %v4760_v22 = vsel %vm511_vm3, %v1571_v30, %v1573_v11  ;;  %5965 = vst [vmem:[#allocation53_spill] sm:$0xff] %v4778_v54  ;;  %v5966_v30 = vpack.i.bf16 %v4367_v56, %v5898_v27  ;;  %v4796_v11 = vld [vmem:[#allocation2 + $0x188] sm:$0xff]  ;;  %v2754_v56 = vunpack.i.l.bf16 %v4493_v26 }
  0xed   : > { %3162 = vrot.lane.b32.xlu0 %v3161_v31, %s3493_s11  ;;  %v4749_v35 = vsel %vm688_vm4, %v5963_v51, %v1213_v52  ;;  %v4766_v51 = vsel %vm688_vm4, %v1746_v0, %v1747_v2  ;;  %v4769_v52 = vsel %vm511_vm3, %v1531_v44, %v1533_v9  ;;  %v5967_v0 = vld [vmem:[#allocation42_spill] sm:$0xff]  ;;  %v5969_v44 = vld [vmem:[#allocation19_spill] sm:$0xff]  ;;  %v4794_v2 = vld [vmem:[#allocation2 + $0x180] sm:$0xff] }
  0xee   : > { %v4740_v17 = vpop.permute.xlu1 %2877  ;;  %v4788_v9 = vsel %vm511_vm3, %v5967_v0, %v1082_v62  ;;  %v4792_v42 = vsel %vm511_vm3, %v5969_v44, %v1042_v13  ;;  %v5972_v27 = vld [vmem:[#allocation48_spill] sm:$0xff]  ;;  %v1575_v13 = vrot.slane %v4794_v2, 1  ;;  %v5977_v0 = vpack.i.bf16 %v4383_v20, %v4176_v60  ;;  %v3376_v54 = vld [vmem:[#allocation2 + $0x78] sm:$0xff] }
  0xef   : > { %v4753_v31 = vpop.permute.xlu0 %2882  ;;  %5968 = vst [vmem:[#allocation55_spill] sm:$0xff] %v4788_v9  ;;  %5970 = vst [vmem:[#allocation25_spill] sm:$0xff] %v4792_v42  ;;  %v2755_v42 = vunpack.i.h.bf16 %v4493_v26  ;;  %v2760_v60 = vunpack.i.h.bf16 %v4503_v21  ;;  %v2759_v20 = vunpack.i.l.bf16 %v4503_v21  ;;  %v3375_v26 = vld [vmem:[#allocation2 + $0x80] sm:$0xff]  ;;  %v2840_v9 = vunpack.i.h.bf16 %v4615_v8 }
  0xf0   : > { %3167 = vrot.lane.b32.xlu1 %v3166_v33, %s3493_s11  ;;  %v4775_v33 = vsel %vm688_vm4, %v1706_v48, %v1707_v1  ;;  %v4804_v48 = vsel %vm688_vm4, %v5972_v27, %v1218_v34  ;;  %v4823_v1 = vld [vmem:[#allocation2 + $0xc8] sm:$0xff]  ;;  %v4837_v27 = vld [vmem:[#allocation2 + $0xc0] sm:$0xff]  ;;  %v4845_v34 = vld [vmem:[#allocation2 + $0xd0] sm:$0x3] }
  0xf1   : > { %5964 = vst [vmem:[#allocation57_spill] sm:$0xff] %v4775_v33  ;;  %3172 = vrot.lane.b32.xlu0 %v5966_v30, %s3489_s7  ;;  %5973 = vst [vmem:[#allocation27_spill] sm:$0xff] %v4804_v48  ;;  %v2835_v33 = vunpack.i.h.bf16 %v4590_v14  ;;  %v3373_v30 = vld [vmem:[#allocation2 + $0x68] sm:$0xff] }
  0xf2   : > { %v4784_v23 = vpop.permute.xlu1 %2887  ;;  %v1867_v48 = vsel %vm188_vm0, %v3373_v30, %v2755_v42  ;;  %v2770_v30 = vunpack.i.h.bf16 %v4514_v29 }
  0xf3   : > { %v4806_v62 = vpop.permute.xlu0 %2892 }
  0xf4   : > { %5974 = vst [vmem:[#allocation58_spill] sm:$0xff] %v4806_v62  ;;  %3177 = vrot.lane.b32.xlu1 %v3176_v61, %s3489_s7  ;;  %v2765_v62 = vunpack.i.h.bf16 %v4505_v50  ;;  %v5981_v61 = vpack.i.bf16 %v4387_v58, %v5905_v25  ;;  %v5982_v50 = vrot.slane %v4796_v11, 1  ;;  %v2834_v25 = vunpack.i.l.bf16 %v4590_v14 }
  0xf5   : > { %3182 = vrot.lane.b32.xlu0 %v5977_v0, %s3490_s8  ;;  %v4843_v0 = vld [vmem:[#allocation2 + $0x190] sm:$0x3]  ;;  %v5984_v58 = vpack.i.bf16 %v4598_v41, %v4607_v6  ;;  %v1869_v14 = vsel %vm188_vm0, %v3375_v26, %v2760_v60  ;;  %v3377_v41 = vld [vmem:[#allocation2 + $0x98] sm:$0xff]  ;;  %v2845_v26 = vunpack.i.h.bf16 %v4626_v49 }
  0xf6   : > { %v4829_v44 = vpop.permute.xlu1 %2897  ;;  %v1871_v6 = vsel %vm188_vm0, %v3377_v41, %v2765_v62 }
  0xf7   : > { %5978 = vst [vmem:[#allocation10_spill] sm:$0xff] %v4829_v44  ;;  %v4849_v44 = vpop.permute.xlu0 %2902 }
  0xf8   : > { %5980 = vst [vmem:[#allocation26_spill] sm:$0xff] %v4849_v44  ;;  %3187 = vrot.lane.b32.xlu1 %v5981_v61, %s3490_s8  ;;  %v4864_v44 = vsel %vm511_vm3, %v1575_v13, %v5982_v50  ;;  %v3374_v13 = vld [vmem:[#allocation2 + $0x60] sm:$0xff] }
  0xf9   : > { %5983 = vst [vmem:[#allocation13_spill] sm:$0xff] %v4864_v44  ;;  %3192 = vrot.lane.b32.xlu0 %v5984_v58, %s3491_s9  ;;  %v1866_v50 = vsel %vm188_vm0, %v3374_v13, %v2754_v56  ;;  %v1868_v44 = vsel %vm188_vm0, %v3376_v54, %v2759_v20  ;;  %v3378_v58 = vld [vmem:[#allocation2 + $0x90] sm:$0xff]  ;;  %v5986_v56 = vpack.i.bf16 %v4609_v18, %v4620_v40  ;;  %v2769_v54 = vunpack.i.l.bf16 %v4514_v29 }
  0xfa   : > { %v4872_v61 = vpop.permute.xlu1 %2907  ;;  %v1870_v21 = vsel %vm188_vm0, %v3378_v58, %v2764_v7  ;;  %v1899_v62 = vsel %vm1890_vm5, %v1866_v50, %v2834_v25  ;;  %v1900_v7 = vsel %vm1890_vm5, %v1867_v48, %v2835_v33  ;;  %v5987_v13 = vpack.i.bf16 %v4668_v38, %v4662_v53 }
  0xfb   : > { %5985 = vst [vmem:[#allocation15_spill] sm:$0xff] %v4872_v61  ;;  %v2839_v61 = vunpack.i.l.bf16 %v4615_v8  ;;  %v2913_v42 = vpop.permute.xlu0 %2912  ;;  %v2844_v8 = vunpack.i.l.bf16 %v4626_v49  ;;  %v1902_v33 = vsel %vm1890_vm5, %v1869_v14, %v2840_v9  ;;  %v2850_v49 = vunpack.i.h.bf16 %v4639_v47  ;;  %v3379_v14 = vld [vmem:[#allocation2 + $0xb0] sm:$0xff] }
  0xfc   : > { %3197 = vrot.lane.b32.xlu1 %v5986_v56, %s3491_s9  ;;  %v2915_v60 = vunpack.i.h.bf16 %v2913_v42  ;;  %v2914_v20 = vunpack.i.l.bf16 %v2913_v42  ;;  %v2849_v50 = vunpack.i.l.bf16 %v4639_v47  ;;  %v5988_v53 = vpack.i.bf16 %v4674_v10, %v4671_v36 }
  0xfd   : > { %3202 = vrot.lane.b32.xlu0 %v5987_v13, %s3492_s10  ;;  %v1901_v48 = vsel %vm1890_vm5, %v1868_v44, %v2839_v61  ;;  %v1873_v44 = vsel %vm188_vm0, %v3379_v14, %v2770_v30  ;;  %v3380_v61 = vld [vmem:[#allocation2 + $0xa8] sm:$0xff]  ;;  %v5991_v36 = vpack.i.bf16 %v4683_v12, %v4665_v37  ;;  %v5994_v37 = vpack.i.bf16 %v4686_v45, %v4677_v32  ;;  %v3387_v45 = vld [vmem:[#allocation2 + $0x150] sm:$0xff] }
  0xfe   : > { %v2918_v18 = vpop.permute.xlu1 %2917  ;;  %v4899_v40 = vsel %vm1923_vm6, %v1899_v62, %v2914_v20  ;;  %v4902_v29 = vsel %vm1923_vm6, %v1900_v7, %v2915_v60  ;;  %v1872_v47 = vsel %vm188_vm0, %v3380_v61, %v2769_v54  ;;  %v1903_v60 = vsel %vm1890_vm5, %v1870_v21, %v2844_v8 }
  0xff   : > { %v2920_v41 = vunpack.i.h.bf16 %v2918_v18  ;;  %v2919_v25 = vunpack.i.l.bf16 %v2918_v18  ;;  %v2923_v58 = vpop.permute.xlu0 %2922  ;;  %v1904_v20 = vsel %vm1890_vm5, %v1871_v6, %v2845_v26  ;;  %v4932_v18 = vld [vmem:[#allocation2 + $0xd0] sm:$0x3]  ;;  %v1906_v21 = vsel %vm1890_vm5, %v1873_v44, %v2850_v49 }
 0x100   : > { %3207 = vrot.lane.b32.xlu1 %v5988_v53, %s3492_s10  ;;  %v2925_v56 = vunpack.i.h.bf16 %v2923_v58  ;;  %v2924_v9 = vunpack.i.l.bf16 %v2923_v58  ;;  %v1905_v6 = vsel %vm1890_vm5, %v1872_v47, %v2849_v50  ;;  %v5995_v12 = vrot.slane %v4796_v11, 2 }
 0x101   : > { %v4913_v38 = vsel %vm1923_vm6, %v1901_v48, %v2919_v25  ;;  %v4916_v42 = vsel %vm1923_vm6, %v1902_v33, %v2920_v41  ;;  %3212 = vrot.lane.b32.xlu0 %v5991_v36, %s3493_s11  ;;  %v5996_v26 = vrot.slane %v4794_v2, 2  ;;  %v1754_v41 = vrot.slane %v4843_v0, 2 }
 0x102   : > { %5989 = vst [vmem:[#allocation16_spill] sm:$0xff] %v4913_v38  ;;  %5990 = vst [vmem:[#allocation18_spill] sm:$0xff] %v4916_v42  ;;  %v2928_v10 = vpop.permute.xlu1 %2927  ;;  %v4927_v62 = vsel %vm1923_vm6, %v1903_v60, %v2924_v9  ;;  %v4930_v7 = vsel %vm1923_vm6, %v1904_v20, %v2925_v56  ;;  %v2735_v25 = vunpack.i.h.bf16 %v4456_v59  ;;  %v1714_v32 = vrot.slane %v4845_v34, 2  ;;  %v6004_v20 = vld [vmem:[#allocation34_spill] sm:$0xff]  ;;  %v3394_v38 = vld [vmem:[#allocation2 + $0xc0] sm:$0xff] }
 0x103   : > { %5992 = vst [vmem:[#allocation41_spill] sm:$0xff] %v4927_v62  ;;  %5993 = vst [vmem:[#allocation17_spill] sm:$0xff] %v4930_v7  ;;  %v2930_v30 = vunpack.i.h.bf16 %v2928_v10  ;;  %v2929_v13 = vunpack.i.l.bf16 %v2928_v10  ;;  %v4936_v54 = vpop.permute.xlu0 %2932  ;;  %v4947_v8 = vsel %vm688_vm4, %v5996_v26, %v5995_v12  ;;  %v5999_v49 = vpack.i.bf16 %v4722_v46, %v5961_v63  ;;  %v3381_v26 = vld [vmem:[#allocation2 + $0x8] sm:$0xff]  ;;  %v6048_v62 = vld [vmem:[#allocation22_spill] sm:$0xff] }
 0x104   : > { %3217 = vrot.lane.b32.xlu1 %v5994_v37, %s3493_s11  ;;  %v6000_v58 = vrot.slane %v4823_v1, 1  ;;  %v6001_v53 = vrot.slane %v4837_v27, 1  ;;  %v6002_v9 = vrot.slane %v4823_v1, 2  ;;  %v6003_v14 = vrot.slane %v4837_v27, 2  ;;  %v6047_v7 = vld [vmem:[#allocation25_spill] sm:$0xff] }
 0x105   : > { %v4952_v33 = vsel %vm1923_vm6, %v1905_v6, %v2929_v13  ;;  %v4955_v48 = vsel %vm1923_vm6, %v1906_v21, %v2930_v30  ;;  %3222 = vrot.lane.b32.xlu0 %v5999_v49, %s3489_s7  ;;  %v1047_v61 = vrot.slane %v4932_v18, 1  ;;  %v2795_v63 = vunpack.i.h.bf16 %v4534_v4 }
 0x106   : > { %5997 = vst [vmem:[#allocation43_spill] sm:$0xff] %v4952_v33  ;;  %5998 = vst [vmem:[#allocation20_spill] sm:$0xff] %v4955_v48  ;;  %v4963_v50 = vpop.permute.xlu1 %2937  ;;  %v4970_v56 = vsel %vm511_vm3, %v6001_v53, %v6000_v58  ;;  %v4977_v44 = vsel %vm688_vm4, %v6003_v14, %v6002_v9  ;;  %v2794_v46 = vunpack.i.l.bf16 %v4534_v4  ;;  %v2800_v47 = vunpack.i.h.bf16 %v4544_v43  ;;  %v6013_v14 = vld [vmem:[#allocation28_spill] sm:$0xff] }
 0x107   : > { %v2799_v60 = vunpack.i.l.bf16 %v4544_v43  ;;  %v2805_v36 = vunpack.i.h.bf16 %v6004_v20  ;;  %v2804_v10 = vunpack.i.l.bf16 %v6004_v20  ;;  %v4986_v30 = vpop.permute.xlu0 %2942  ;;  %v6005_v13 = vpack.i.bf16 %v4726_v28, %v5962_v3  ;;  %v6014_v20 = vld [vmem:[#allocation59_spill] sm:$0xff] }
 0x108   : > { %v6006_v21 = vrot.slane %v4843_v0, 1  ;;  %v6007_v6 = vrot.slane %v4796_v11, 1  ;;  %v6008_v43 = vrot.slane %v4845_v34, 1  ;;  %v6009_v37 = vmov %v6000_v58  ;;  %v6012_v34 = vld [vmem:[#allocation39_spill] sm:$0xff] }
 0x109   : > { %3227 = vrot.lane.b32.xlu1 %v6005_v13, %s3489_s7  ;;  %v5007_v49 = vsel %vm188_vm0, %v3381_v26, %v2735_v25  ;;  %v6010_v3 = vrot.slane %v4796_v11, 2  ;;  %v6011_v0 = vmov %v6002_v9  ;;  %v2875_v53 = vunpack.i.h.bf16 %v6012_v34 }
 0x10a   : > { %v4997_v4 = vsel %vm511_vm3, %v6007_v6, %v6006_v21  ;;  %v5004_v12 = vsel %vm511_vm3, %v6009_v37, %v6008_v43  ;;  %v5017_v58 = vsel %vm688_vm4, %v6011_v0, %v1714_v32  ;;  %v2874_v9 = vunpack.i.l.bf16 %v6012_v34  ;;  %v5025_v25 = vpop.permute.xlu1 %2947  ;;  %v6016_v21 = vld [vmem:[#allocation23_spill] sm:$0xff]  ;;  %v3382_v43 = vld [vmem:[#allocation2 + $0x128] sm:$0xff]  ;;  %v3383_v37 = vld [vmem:[#allocation2 + $0x120] sm:$0xff] }
 0x10b   : > { %v5012_v28 = vsel %vm688_vm4, %v6010_v3, %v1754_v41  ;;  %v6015_v13 = vpack.i.bf16 %v6013_v14, %v6014_v20  ;;  %v5029_v41 = vsel %vm511_vm3, %v6016_v21, %v1047_v61  ;;  %v1883_v32 = vsel %vm188_vm0, %v3382_v43, %v2795_v63  ;;  %v3384_v3 = vld [vmem:[#allocation2 + $0x140] sm:$0xff]  ;;  %v3385_v34 = vld [vmem:[#allocation2 + $0x138] sm:$0xff]  ;;  %v2953_v63 = vpop.permute.xlu0 %2952 }
 0x10c   : > { %v1882_v26 = vsel %vm188_vm0, %v3383_v37, %v2794_v46  ;;  %v1885_v0 = vsel %vm188_vm0, %v3384_v3, %v2800_v47  ;;  %v1884_v14 = vsel %vm188_vm0, %v3385_v34, %v2799_v60  ;;  %v3386_v20 = vld [vmem:[#allocation2 + $0x158] sm:$0xff]  ;;  %v1886_v61 = vsel %vm188_vm0, %v3387_v45, %v2804_v10  ;;  %v6018_v47 = vld [vmem:[#allocation40_spill] sm:$0xff] }
 0x10d   : > { %3232 = vrot.lane.b32.xlu0 %v6015_v13, %s3490_s8  ;;  %v1887_v13 = vsel %vm188_vm0, %v3386_v20, %v2805_v36  ;;  %v2880_v21 = vunpack.i.h.bf16 %v4740_v17  ;;  %v2879_v6 = vunpack.i.l.bf16 %v4740_v17  ;;  %v6017_v46 = vpack.i.bf16 %v4749_v35, %v5971_v39 }
 0x10e   : > { %v2810_v43 = vunpack.i.h.bf16 %v6018_v47  ;;  %v2809_v60 = vunpack.i.l.bf16 %v6018_v47  ;;  %v2955_v37 = vunpack.i.h.bf16 %v2953_v63  ;;  %v2954_v3 = vunpack.i.l.bf16 %v2953_v63  ;;  %v2958_v35 = vpop.permute.xlu1 %2957 }
 0x10f   : > { %3237 = vrot.lane.b32.xlu1 %v6017_v46, %s3490_s8  ;;  %v1915_v36 = vsel %vm1890_vm5, %v1882_v26, %v2874_v9  ;;  %v1916_v45 = vsel %vm1890_vm5, %v1883_v32, %v2875_v53  ;;  %v2885_v10 = vunpack.i.h.bf16 %v4753_v31  ;;  %v2884_v17 = vunpack.i.l.bf16 %v4753_v31  ;;  %v2963_v46 = vpop.permute.xlu0 %2962 }
 0x110   : > { %v6019_v34 = vpack.i.bf16 %v4703_v57, %v4701_v19  ;;  %v5055_v39 = vsel %vm1923_vm6, %v1915_v36, %v2954_v3  ;;  %v5058_v20 = vsel %vm1923_vm6, %v1916_v45, %v2955_v37  ;;  %v2960_v63 = vunpack.i.h.bf16 %v2958_v35 }
 0x111   : > { %v2959_v9 = vunpack.i.l.bf16 %v2958_v35  ;;  %v1918_v53 = vsel %vm1890_vm5, %v1885_v0, %v2880_v21  ;;  %v1917_v32 = vsel %vm1890_vm5, %v1884_v14, %v2879_v6  ;;  %v2890_v31 = vunpack.i.h.bf16 %v4784_v23  ;;  %v3388_v21 = vld [vmem:[#allocation2 + $0x170] sm:$0xff]  ;;  %v3389_v14 = vld [vmem:[#allocation2 + $0x168] sm:$0xff] }
 0x112   : > { %3242 = vrot.lane.b32.xlu0 %v6019_v34, %s3491_s9  ;;  %v2889_v26 = vunpack.i.l.bf16 %v4784_v23  ;;  %v6020_v19 = vpack.i.bf16 %v4715_v55, %v4713_v24  ;;  %v5072_v47 = vsel %vm1923_vm6, %v1918_v53, %v2960_v63  ;;  %v2965_v37 = vunpack.i.h.bf16 %v2963_v46  ;;  %v2968_v55 = vpop.permute.xlu1 %2967  ;;  %v6026_v63 = vld [vmem:[#allocation12_spill] sm:$0xff] }
 0x113   : > { %v5069_v57 = vsel %vm1923_vm6, %v1917_v32, %v2959_v9  ;;  %6022 = vst [vmem:[#allocation42_spill] sm:$0xff] %v5072_v47  ;;  %v2964_v0 = vunpack.i.l.bf16 %v2963_v46  ;;  %v1889_v6 = vsel %vm188_vm0, %v3388_v21, %v2810_v43  ;;  %v1888_v23 = vsel %vm188_vm0, %v3389_v14, %v2809_v60  ;;  %v5100_v9 = vld [vmem:[#allocation2 + $0x1a0] sm:$0xff]  ;;  %v6034_v21 = vld [vmem:[#allocation13_spill] sm:$0xff] }
 0x114   : > { %3247 = vrot.lane.b32.xlu1 %v6020_v19, %s3491_s9  ;;  %6021 = vst [vmem:[#allocation47_spill] sm:$0xff] %v5069_v57  ;;  %v1919_v3 = vsel %vm1890_vm5, %v1886_v61, %v2884_v17  ;;  %v1920_v36 = vsel %vm1890_vm5, %v1887_v13, %v2885_v10  ;;  %v6023_v24 = vpack.i.bf16 %v4760_v22, %v4757_v16  ;;  %v2970_v43 = vunpack.i.h.bf16 %v2968_v55  ;;  %v5092_v17 = vpop.permute.xlu0 %2972  ;;  %v5098_v22 = vld [vmem:[#allocation2 + $0x198] sm:$0xff]  ;;  %v3390_v19 = vld [vmem:[#allocation2] sm:$0xff] }
 0x115   : > { %v5083_v45 = vsel %vm1923_vm6, %v1919_v3, %v2964_v0  ;;  %v5086_v34 = vsel %vm1923_vm6, %v1920_v36, %v2965_v37  ;;  %v2969_v35 = vunpack.i.l.bf16 %v2968_v55  ;;  %v2740_v60 = vunpack.i.h.bf16 %v6026_v63  ;;  %v5133_v3 = vld [vmem:[#allocation2 + $0x1a8] sm:$0x3]  ;;  %v6040_v36 = vld [vmem:[#allocation30_spill] sm:$0xff] }
 0x116   : > { %3252 = vrot.lane.b32.xlu0 %v6023_v24, %s3492_s10  ;;  %6024 = vst [vmem:[#allocation19_spill] sm:$0xff] %v5083_v45  ;;  %6025 = vst [vmem:[#allocation50_spill] sm:$0xff] %v5086_v34  ;;  %v2739_v61 = vunpack.i.l.bf16 %v6026_v63  ;;  %v1922_v13 = vsel %vm1890_vm5, %v1889_v6, %v2890_v31  ;;  %v1921_v10 = vsel %vm1890_vm5, %v1888_v23, %v2889_v26  ;;  %v6030_v31 = vrot.slane %v4932_v18, 2  ;;  %v6031_v26 = vld [vmem:[#allocation52_spill] sm:$0xff]  ;;  %v5121_v0 = vpop.permute.xlu1 %2977  ;;  %v5129_v23 = vld [vmem:[#allocation2 + $0xd8] sm:$0xff] }
 0x117   : > { %v6027_v16 = vpack.i.bf16 %v4769_v52, %v4763_v5  ;;  %v5103_v53 = vsel %vm1923_vm6, %v1921_v10, %v2969_v35  ;;  %v5106_v32 = vsel %vm1923_vm6, %v1922_v13, %v2970_v43  ;;  %v6032_v5 = vunpack.i.l.bf16 %v4456_v59  ;;  %v5131_v59 = vld [vmem:[#allocation2 + $0xe0] sm:$0xff]  ;;  %v3392_v63 = vld [vmem:[#allocation2 + $0x18] sm:$0xff]  ;;  %v5171_v18 = vld [vmem:[#allocation2 + $0xe8] sm:$0x3] }
 0x118   : > { %6028 = vst [vmem:[#allocation48_spill] sm:$0xff] %v5103_v53  ;;  %6029 = vst [vmem:[#allocation34_spill] sm:$0xff] %v5106_v32  ;;  %v5112_v46 = vsel %vm688_vm4, %v6031_v26, %v6030_v31  ;;  %v6033_v37 = vpack.i.bf16 %v4772_v15, %v4766_v51  ;;  %v6035_v15 = vld [vmem:[#allocation24_spill] sm:$0xff]  ;;  %v1581_v24 = vrot.slane %v5100_v9, 1  ;;  %v1580_v55 = vrot.slane %v5098_v22, 1  ;;  %v5147_v10 = vpop.permute.xlu0 %2982  ;;  %v6037_v31 = vld [vmem:[#allocation57_spill] sm:$0xff] }
 0x119   : > { %3257 = vrot.lane.b32.xlu1 %v6027_v16, %s3492_s10  ;;  %v1858_v52 = vsel %vm188_vm0, %v3390_v19, %v6032_v5  ;;  %v3391_v43 = vld [vmem:[#allocation2 + $0x20] sm:$0xff]  ;;  %v5145_v13 = vsel %vm188_vm0, %v3392_v63, %v2739_v61  ;;  %v6036_v16 = vld [vmem:[#allocation53_spill] sm:$0xff]  ;;  %v6039_v19 = vld [vmem:[#allocation54_spill] sm:$0xff]  ;;  %v1540_v61 = vrot.slane %v5129_v23, 1  ;;  %v1583_v63 = vrot.slane %v5133_v3, 1 }
 0x11a   : > { %3262 = vrot.lane.b32.xlu0 %v6033_v37, %s3493_s11  ;;  %v5142_v35 = vsel %vm188_vm0, %v3391_v43, %v2740_v60  ;;  %v6038_v26 = vpack.i.bf16 %v6036_v16, %v6037_v31  ;;  %v2775_v51 = vunpack.i.h.bf16 %v6040_v36  ;;  %v2774_v14 = vunpack.i.l.bf16 %v6040_v36  ;;  %v6041_v16 = vld [vmem:[#allocation55_spill] sm:$0xff]  ;;  %v6042_v31 = vld [vmem:[#allocation44_spill] sm:$0xff]  ;;  %v5167_v5 = vpop.permute.xlu1 %2987  ;;  %v6046_v53 = vld [vmem:[#allocation58_spill] sm:$0xff] }
 0x11b   : > { %v6044_v6 = vld [vmem:[#allocation31_spill] sm:$0xff]  ;;  %v5177_v33 = vsel %vm511_vm3, %v1580_v55, %v1581_v24  ;;  %v2895_v32 = vunpack.i.h.bf16 %v6046_v53  ;;  %v2894_v60 = vunpack.i.l.bf16 %v6046_v53  ;;  %v6049_v34 = vpack.i.bf16 %v6047_v7, %v6048_v62  ;;  %v3393_v45 = vld [vmem:[#allocation2 + $0xc8] sm:$0xff] }
 0x11c   : > { %v2815_v43 = vunpack.i.h.bf16 %v6044_v6  ;;  %v2814_v48 = vunpack.i.l.bf16 %v6044_v6  ;;  %v2993_v37 = vpop.permute.xlu0 %2992  ;;  %v5188_v6 = vsel %vm511_vm3, %v1581_v24, %v1583_v63  ;;  %v6050_v55 = vrot.slane %v5131_v59, 1  ;;  %v6051_v24 = vld [vmem:[#allocation29_spill] sm:$0xff]  ;;  %v6052_v63 = vld [vmem:[#allocation11_spill] sm:$0xff] }
 0x11d   : > { %3267 = vrot.lane.b32.xlu1 %v6038_v26, %s3493_s11  ;;  %v6043_v26 = vpack.i.bf16 %v6041_v16, %v6042_v31  ;;  %v6045_v16 = vld [vmem:[#allocation35_spill] sm:$0xff]  ;;  %v1875_v42 = vsel %vm188_vm0, %v3393_v45, %v2775_v51  ;;  %v1874_v62 = vsel %vm188_vm0, %v3394_v38, %v2774_v14  ;;  %v2935_v7 = vunpack.i.h.bf16 %v4936_v54 }
 0x11e   : > { %v2855_v31 = vunpack.i.h.bf16 %v6045_v16  ;;  %v5193_v36 = vsel %vm511_vm3, %v1540_v61, %v6050_v55  ;;  %v6053_v57 = vpack.i.bf16 %v6051_v24, %v6052_v63  ;;  %v2998_v61 = vpop.permute.xlu1 %2997  ;;  %v1892_v55 = vsel %vm1890_vm5, %v5007_v49, %v2815_v43  ;;  %v6054_v63 = vld [vmem:[#allocation27_spill] sm:$0xff] }
 0x11f   : > { %3272 = vrot.lane.b32.xlu0 %v6043_v26, %s3489_s7  ;;  %v2854_v26 = vunpack.i.l.bf16 %v6045_v16  ;;  %v1891_v45 = vsel %vm1890_vm5, %v1858_v52, %v2814_v48  ;;  %v2985_v51 = vunpack.i.h.bf16 %v5147_v10  ;;  %v2984_v38 = vunpack.i.l.bf16 %v5147_v10  ;;  %v6055_v16 = vld [vmem:[#allocation51_spill] sm:$0xff] }
 0x120   : > { %v1924_v53 = vsel %vm1923_vm6, %v1891_v45, %v2894_v60  ;;  %v3003_v24 = vpop.permute.xlu0 %3002  ;;  %v6056_v47 = vpack.i.bf16 %v6054_v63, %v6055_v16  ;;  %v2975_v48 = vunpack.i.h.bf16 %v5092_v17  ;;  %v2974_v49 = vunpack.i.l.bf16 %v5092_v17 }
 0x121   : > { %3277 = vrot.lane.b32.xlu1 %v6049_v34, %s3489_s7  ;;  %v2934_v34 = vunpack.i.l.bf16 %v4936_v54  ;;  %v1907_v14 = vsel %vm1890_vm5, %v1874_v62, %v2854_v26  ;;  %v1908_v54 = vsel %vm1890_vm5, %v1875_v42, %v2855_v31  ;;  %v2990_v52 = vunpack.i.h.bf16 %v5167_v5 }
 0x122   : > { %v2989_v10 = vunpack.i.l.bf16 %v5167_v5  ;;  %v1941_v60 = vsel %vm1923_vm6, %v1908_v54, %v2935_v7  ;;  %v2995_v43 = vunpack.i.h.bf16 %v2993_v37  ;;  %v6057_v31 = vpack.i.bf16 %v4796_v11, %v4794_v2 }
 0x123   : > { %3282 = vrot.lane.b32.xlu0 %v6053_v57, %s3490_s8  ;;  %v1925_v57 = vsel %vm1923_vm6, %v1892_v55, %v2895_v32  ;;  %v1940_v42 = vsel %vm1923_vm6, %v1907_v14, %v2934_v34  ;;  %v2994_v32 = vunpack.i.l.bf16 %v2993_v37  ;;  %v1974_v17 = vsel %vm1956_vm7, %v1941_v60, %v2985_v51 }
 0x124   : > { %v1973_v26 = vsel %vm1956_vm7, %v1940_v42, %v2984_v38  ;;  %v3000_v16 = vunpack.i.h.bf16 %v2998_v61  ;;  %v2999_v62 = vunpack.i.l.bf16 %v2998_v61  ;;  %v3005_v55 = vunpack.i.h.bf16 %v3003_v24  ;;  %v3013_v14 = vpop.permute.xlu0 %3012 }
 0x125   : > { %3287 = vrot.lane.b32.xlu1 %v6056_v47, %s3490_s8  ;;  %v3008_v47 = vpop.permute.xlu1 %3007  ;;  %v3004_v5 = vunpack.i.l.bf16 %v3003_v24  ;;  %v6058_v37 = vpack.i.bf16 %v4823_v1, %v4837_v27  ;;  %v1957_v2 = vsel %vm1956_vm7, %v1924_v53, %v2974_v49  ;;  %v1958_v11 = vsel %vm1956_vm7, %v1925_v57, %v2975_v48 }
 0x126   : > { %v3010_v45 = vunpack.i.h.bf16 %v3008_v47  ;;  %v3009_v34 = vunpack.i.l.bf16 %v3008_v47  ;;  %v2006_v7 = vsel %vm1989_vm8, %v1973_v26, %v2989_v10  ;;  %v2007_v51 = vsel %vm1989_vm8, %v1974_v17, %v2990_v52 }
 0x127   : > { %3292 = vrot.lane.b32.xlu0 %v6057_v31, %s3491_s9  ;;  %v1990_v61 = vsel %vm1989_vm8, %v1957_v2, %v2994_v32  ;;  %v1991_v38 = vsel %vm1989_vm8, %v1958_v11, %v2995_v43  ;;  %v3015_v54 = vunpack.i.h.bf16 %v3013_v14  ;;  %v3014_v24 = vunpack.i.l.bf16 %v3013_v14  ;;  %v6068_v2 = vld [vmem:[#allocation37_spill] sm:$0xff] }
 0x128   : > { %v6059_v63 = vpack.i.bf16 %v4997_v4, %v6034_v21  ;;  %v2039_v27 = vsel %vm2022_vm9, %v2006_v7, %v2999_v62  ;;  %v2040_v53 = vsel %vm2022_vm9, %v2007_v51, %v3000_v16  ;;  %v2023_v49 = vsel %vm2022_vm9, %v1990_v61, %v3004_v5  ;;  %v3023_v10 = vpop.permute.xlu0 %3022 }
 0x129   : > { %3297 = vrot.lane.b32.xlu1 %v6058_v37, %s3491_s9  ;;  %v3018_v1 = vpop.permute.xlu1 %3017  ;;  %v2024_v52 = vsel %vm2022_vm9, %v1991_v38, %v3005_v55  ;;  %v6060_v42 = vpack.i.bf16 %v5004_v12, %v4970_v56  ;;  %v2072_v4 = vsel %vm2055_vm10, %v2039_v27, %v3009_v34  ;;  %v2073_v21 = vsel %vm2055_vm10, %v2040_v53, %v3010_v45 }
 0x12a   : > { %v3020_v57 = vunpack.i.h.bf16 %v3018_v1  ;;  %v3019_v48 = vunpack.i.l.bf16 %v3018_v1  ;;  %v3025_v60 = vunpack.i.h.bf16 %v3023_v10  ;;  %v3024_v43 = vunpack.i.l.bf16 %v3023_v10  ;;  %v6075_v10 = vld [vmem:[#allocation7_spill] sm:$0xff] }
 0x12b   : > { %3302 = vrot.lane.b32.xlu0 %v6059_v63, %s3492_s10  ;;  %v2056_v26 = vsel %vm2055_vm10, %v2023_v49, %v3014_v24  ;;  %v2057_v56 = vsel %vm2055_vm10, %v2024_v52, %v3015_v54  ;;  %v6063_v12 = vpack.i.bf16 %v5012_v28, %v4947_v8  ;;  %v6064_v62 = vrot.slane %v5100_v9, 2  ;;  %v6072_v63 = vld [vmem:[#allocation36_spill] sm:$0xff]  ;;  %v6074_v52 = vld [vmem:[#allocation33_spill] sm:$0xff] }
 0x12c   : > { %v2105_v32 = vsel %vm2088_vm11, %v2072_v4, %v3019_v48  ;;  %v2106_v31 = vsel %vm2088_vm11, %v2073_v21, %v3020_v57  ;;  %v6065_v55 = vrot.slane %v5098_v22, 2  ;;  %v2089_v45 = vsel %vm2088_vm11, %v2056_v26, %v3024_v43  ;;  %v5287_v51 = vpop.permute.xlu0 %3032 }
 0x12d   : > { %3307 = vrot.lane.b32.xlu1 %v6060_v42, %s3492_s10  ;;  %v3028_v17 = vpop.permute.xlu1 %3027  ;;  %v2618_v16 = vpack.c.bf16 %v2106_v31, %v2105_v32  ;;  %v2090_v34 = vsel %vm2088_vm11, %v2057_v56, %v3025_v60  ;;  %v6066_v14 = vrot.slane %v5171_v18, 1  ;;  %v6067_v37 = vrot.slane %v5131_v59, 1  ;;  %v3395_v56 = vld [vmem:[#allocation2 + $0xe0] sm:$0xff] }
 0x12e   : > { %v5273_v5 = vsel %vm688_vm4, %v6065_v55, %v6064_v62  ;;  %v1719_v28 = vrot.slane %v5171_v18, 2  ;;  %v2780_v11 = vunpack.i.h.bf16 %v6068_v2  ;;  %v2779_v7 = vunpack.i.l.bf16 %v6068_v2 }
 0x12f   : > { %3312 = vrot.lane.b32.xlu0 %v6063_v12, %s3493_s11  ;;  %v5282_v8 = vsel %vm511_vm3, %v6067_v37, %v6066_v14  ;;  %v6069_v61 = vpack.i.bf16 %v5017_v58, %v4977_v44  ;;  %2620 = vmatprep.subr.msk.bf16.mxu0 %vm5258_vm13, %v2618_v16  ;;  %v2621_v38 = vpack.c.bf16 %v2090_v34, %v2089_v45  ;;  %v6070_v54 = vrot.slane %v5133_v3, 2  ;;  %v6073_v58 = vld [vmem:[#allocation32_spill] sm:$0xff]  ;;  %v3396_v16 = vld [vmem:[#allocation2 + $0xd8] sm:$0xff]  ;;  %v6081_v37 = vld [vmem:[#allocation10_spill] sm:$0xff] }
 0x130   : > { %v6071_v24 = vmov %v6064_v62  ;;  %v2860_v1 = vunpack.i.h.bf16 %v6072_v63  ;;  %v2859_v27 = vunpack.i.l.bf16 %v6072_v63  ;;  %v3346_v53 = vpack.i.bf16 %v5131_v59, %v5129_v23  ;;  %v3043_v34 = vpop.permute.xlu0 %3042 }
 0x131   : > { %3317 = vrot.lane.b32.xlu1 %v6069_v61, %s3493_s11  ;;  %v5300_v18 = vsel %vm688_vm4, %v6071_v24, %v6070_v54  ;;  %v3351_v44 = vpack.i.bf16 %v5188_v6, %v5177_v33  ;;  %v2820_v57 = vunpack.i.h.bf16 %v6073_v58  ;;  %v2819_v48 = vunpack.i.l.bf16 %v6073_v58  ;;  %2623 = vmatpush3.bf16.xpose.msk.msra.mxu0 %vm5258_vm13, %v2621_v38  ;;  %v3038_v4 = vpop.permute.xlu1 %3037 }
 0x132   : > { %v2940_v3 = vunpack.i.h.bf16 %v4963_v50  ;;  %v2939_v49 = vunpack.i.l.bf16 %v4963_v50  ;;  %v6076_v42 = vpack.i.bf16 %v6074_v52, %v6075_v10  ;;  %v3356_v21 = vpack.i.bf16 %v5282_v8, %v5193_v36 }
 0x133   : > { %v3361_v60 = vpack.i.bf16 %v5300_v18, %v5273_v5  ;;  %v6077_v43 = vrot.slane %v5131_v59, 2  ;;  %v6078_v32 = vrot.slane %v5129_v23, 2  ;;  %v1877_v12 = vsel %vm188_vm0, %v3395_v56, %v2780_v11  ;;  %v6089_v5 = vld [vmem:[#allocation56_spill] sm:$0xff] }
 0x134   : > { %3322 = vrot.lane.b32.xlu0 %v6076_v42, %s3489_s7  ;;  %v1876_v62 = vsel %vm188_vm0, %v3396_v16, %v2779_v7  ;;  %v3030_v55 = vunpack.i.h.bf16 %v3028_v17  ;;  %v3029_v45 = vunpack.i.l.bf16 %v3028_v17  ;;  %v6080_v23 = vpack.i.bf16 %v5029_v41, %v6035_v15  ;;  %v6082_v41 = vld [vmem:[#allocation14_spill] sm:$0xff] }
 0x135   : > { %v5327_v50 = vsel %vm688_vm4, %v6078_v32, %v6077_v43  ;;  %v6079_v31 = vmov %v6077_v43  ;;  %v1910_v14 = vsel %vm1890_vm5, %v1877_v12, %v2860_v1  ;;  %v1909_v59 = vsel %vm1890_vm5, %v1876_v62, %v2859_v27  ;;  %v6083_v15 = vld [vmem:[#allocation6_spill] sm:$0xff]  ;;  %v3048_v54 = vpop.permute.xlu1 %3047 }
 0x136   : > { %v5332_v26 = vsel %vm688_vm4, %v6079_v31, %v1719_v28  ;;  %3327 = vrot.lane.b32.xlu1 %v6080_v23, %s3489_s7  ;;  %v2900_v28 = vunpack.i.h.bf16 %v6081_v37  ;;  %v2899_v2 = vunpack.i.l.bf16 %v6081_v37  ;;  %v1893_v11 = vsel %vm1890_vm5, %v5145_v13, %v2819_v48  ;;  %v3053_v48 = vpop.permute.xlu0 %3052  ;;  %s3405_s7 = scalar_lea.vmem %s5657_s29, 256 }
 0x137   : > { %v1894_v17 = vsel %vm1890_vm5, %v5142_v35, %v2820_v57  ;;  %v1942_v7 = vsel %vm1923_vm6, %v1909_v59, %v2939_v49  ;;  %v1943_v61 = vsel %vm1923_vm6, %v1910_v14, %v2940_v3  ;;  %v6084_v38 = vpack.i.bf16 %v6082_v41, %v6083_v15  ;;  %p3406_p12 = scmp.ne.s32.totalorder %s5657_s29, %s3405_s7 }
 0x138   : > { %v2980_v24 = vunpack.i.h.bf16 %v5121_v0  ;;  %v2979_v63 = vunpack.i.l.bf16 %v5121_v0  ;;  %v3035_v1 = vunpack.i.h.bf16 %v5287_v51  ;;  %v3034_v13 = vunpack.i.l.bf16 %v5287_v51 }
 0x139   : > { %3332 = vrot.lane.b32.xlu0 %v6084_v38, %s3490_s8  ;;  %v1975_v35 = vsel %vm1956_vm7, %v1942_v7, %v3029_v45  ;;  %v1976_v27 = vsel %vm1956_vm7, %v1943_v61, %v3030_v55  ;;  %v3040_v58 = vunpack.i.h.bf16 %v3038_v4  ;;  %v3039_v57 = vunpack.i.l.bf16 %v3038_v4  ;;  %v3058_v31 = vpop.permute.xlu1 %3057  ;;  %p3407_p13 = pnand %p3406_p12, %p3556_p4 }
 0x13a   : > { %v6085_v3 = vpack.i.bf16 %v5112_v46, %v6039_v19  ;;  %v1926_v49 = vsel %vm1923_vm6, %v1893_v11, %v2899_v2  ;;  %v1927_v0 = vsel %vm1923_vm6, %v1894_v17, %v2900_v28  ;;  %v3045_v52 = vunpack.i.h.bf16 %v3043_v34 }
 0x13b   : > { %v3044_v10 = vunpack.i.l.bf16 %v3043_v34  ;;  %v3050_v42 = vunpack.i.h.bf16 %v3048_v54  ;;  %v3049_v51 = vunpack.i.l.bf16 %v3048_v54  ;;  %v3055_v43 = vunpack.i.h.bf16 %v3053_v48  ;;  %v3063_v34 = vpop.permute.xlu0 %3062  ;;  %p3408_p0 = pneg %p3407_p13 }
 0x13c   : > { %3337 = vrot.lane.b32.xlu1 %v6085_v3, %s3490_s8  ;;  %v3054_v32 = vunpack.i.l.bf16 %v3053_v48  ;;  %v6086_v4 = vpack.i.bf16 %v5100_v9, %v5098_v22  ;;  %v1959_v56 = vsel %vm1956_vm7, %v1926_v49, %v2979_v63  ;;  %v1960_v46 = vsel %vm1956_vm7, %v1927_v0, %v2980_v24  ;;  %v3397_v0 = vld [vmem:[#allocation2 + $0x38] sm:$0xff]  ;;  %s3409_s8 = sshll.u32 %s3495_s15, 4  ;;  %s3410_s8 = int_to_ptr.vmem [resolvable:$false] %s3409_s8 }
 0x13d   : > { %v2009_v19 = vsel %vm1989_vm8, %v1976_v27, %v3035_v1  ;;  %v2008_v12 = vsel %vm1989_vm8, %v1975_v35, %v3034_v13  ;;  %v1992_v16 = vsel %vm1989_vm8, %v1959_v56, %v3039_v57  ;;  %v1993_v62 = vsel %vm1989_vm8, %v1960_v46, %v3040_v58  ;;  %v6087_v1 = vld [vmem:[#allocation8_spill] sm:$0xff]  ;;  %v6090_v35 = vld [vmem:[#allocation49_spill] sm:$0xff]  ;;  %v6091_v57 = vld [vmem:[#allocation26_spill] sm:$0xff]  ;;  %p3412_p1 = scmp.lt.s32.totalorder %s5657_s29, %s3410_s8 }
 0x13e   : > { %3342 = vrot.lane.b32.xlu0 %v6086_v4, %s3491_s9  ;;  %v3060_v55 = vunpack.i.h.bf16 %v3058_v31  ;;  %v3059_v45 = vunpack.i.l.bf16 %v3058_v31  ;;  %v2041_v22 = vsel %vm2022_vm9, %v2008_v12, %v3044_v10  ;;  %v2042_v9 = vsel %vm2022_vm9, %v2009_v19, %v3045_v52  ;;  %v3398_v10 = vld [vmem:[#allocation2 + $0x30] sm:$0xff] }
 0x13f   : > { %v3065_v23 = vunpack.i.h.bf16 %v3063_v34  ;;  %v3064_v14 = vunpack.i.l.bf16 %v3063_v34  ;;  %v2025_v59 = vsel %vm2022_vm9, %v1992_v16, %v3049_v51  ;;  %v2026_v37 = vsel %vm2022_vm9, %v1993_v62, %v3050_v42  ;;  %v3073_v54 = vpop.permute.xlu0 %3072  ;;  %v3399_v51 = vld [vmem:[#allocation2 + $0xf8] sm:$0xff] }
 0x140   : > { %3347 = vrot.lane.b32.xlu1 %v3346_v53, %s3491_s9  ;;  %v2074_v28 = vsel %vm2055_vm10, %v2041_v22, %v3054_v32  ;;  %v2075_v2 = vsel %vm2055_vm10, %v2042_v9, %v3055_v43  ;;  %v3068_v53 = vpop.permute.xlu1 %3067  ;;  %v2058_v41 = vsel %vm2055_vm10, %v2025_v59, %v3059_v45  ;;  %v2059_v15 = vsel %vm2055_vm10, %v2026_v37, %v3060_v55  ;;  %v3400_v32 = vld [vmem:[#allocation2 + $0xf0] sm:$0xff]  ;;  %s3411_s9 = scalar_lea.vmem %s3410_s8, 512 }
 0x141   : > { %v2107_v11 = vsel %vm2088_vm11, %v2074_v28, %v3064_v14  ;;  %v2108_v17 = vsel %vm2088_vm11, %v2075_v2, %v3065_v23  ;;  %v3070_v7 = vunpack.i.h.bf16 %v3068_v53  ;;  %v3069_v61 = vunpack.i.l.bf16 %v3068_v53  ;;  %p3413_p2 = scmp.lt.s32.totalorder %s3411_s9, %s3405_s7 }
 0x142   : > { %3352 = vrot.lane.b32.xlu0 %v3351_v44, %s3492_s10  ;;  %v2624_v38 = vpack.c.bf16 %v2108_v17, %v2107_v11  ;;  %v3366_v33 = vpack.i.bf16 %v5332_v26, %v5327_v50  ;;  %v2745_v36 = vunpack.i.h.bf16 %v6087_v1  ;;  %v2744_v8 = vunpack.i.l.bf16 %v6087_v1 }
 0x143   : > { %v2091_v6 = vsel %vm2088_vm11, %v2058_v41, %v3069_v61  ;;  %v2092_v44 = vsel %vm2088_vm11, %v2059_v15, %v3070_v7  ;;  %v3083_v13 = vpop.permute.xlu0 %3082  ;;  %v2825_v18 = vunpack.i.h.bf16 %v6089_v5  ;;  %v2865_v27 = vunpack.i.h.bf16 %v6090_v35  ;;  %p3414_p3 = por %p3413_p2, %p3412_p1 }
 0x144   : > { %3357 = vrot.lane.b32.xlu1 %v3356_v21, %s3492_s10  ;;  %v2627_v24 = vpack.c.bf16 %v2092_v44, %v2091_v6  ;;  %2626 = vmatprep.subr.msk.bf16.mxu0 %vm5258_vm13, %v2624_v38  ;;  %v3078_v63 = vpop.permute.xlu1 %3077  ;;  %v6088_v21 = vld [vmem:[#allocation45_spill] sm:$0xff]  ;;  %v2864_v58 = vunpack.i.l.bf16 %v6090_v35  ;;  %v2905_v48 = vunpack.i.h.bf16 %v6091_v57  ;;  %v2904_v3 = vunpack.i.l.bf16 %v6091_v57 }
 0x145   : > { %v2785_v50 = vunpack.i.h.bf16 %v6088_v21  ;;  %v2784_v26 = vunpack.i.l.bf16 %v6088_v21  ;;  %v1863_v52 = vsel %vm188_vm0, %v3397_v0, %v2745_v36  ;;  %v1862_v42 = vsel %vm188_vm0, %v3398_v10, %v2744_v8  ;;  %p3415_p5 = pnand %p3414_p3, %p3408_p0 }
 0x146   : > { %3362 = vrot.lane.b32.xlu0 %v3361_v60, %s3493_s11  ;;  %2629 = vmatpush3.bf16.xpose.msk.msra.mxu0 %vm5258_vm13, %v2627_v24  ;;  %v2824_v60 = vunpack.i.l.bf16 %v6089_v5  ;;  %v2945_v31 = vunpack.i.h.bf16 %v4986_v30  ;;  %v2944_v56 = vunpack.i.l.bf16 %v4986_v30  ;;  %v1896_v19 = vsel %vm1890_vm5, %v1863_v52, %v2825_v18 }
 0x147   : > { %v1879_v43 = vsel %vm188_vm0, %v3399_v51, %v2785_v50  ;;  %v1878_v4 = vsel %vm188_vm0, %v3400_v32, %v2784_v26  ;;  %v3093_v46 = vpop.permute.xlu0 %3092  ;;  %v3075_v16 = vunpack.i.h.bf16 %v3073_v54  ;;  %v3074_v62 = vunpack.i.l.bf16 %v3073_v54 }
 0x148   : > { %3367 = vrot.lane.b32.xlu1 %v3366_v33, %s3493_s11  ;;  %v3088_v49 = vpop.permute.xlu1 %3087  ;;  %v1895_v12 = vsel %vm1890_vm5, %v1862_v42, %v2824_v60  ;;  %v1911_v55 = vsel %vm1890_vm5, %v1878_v4, %v2864_v58  ;;  %v1912_v45 = vsel %vm1890_vm5, %v1879_v43, %v2865_v27  ;;  %v1929_v22 = vsel %vm1923_vm6, %v1896_v19, %v2905_v48 }
 0x149   : > { %v1928_v34 = vsel %vm1923_vm6, %v1895_v12, %v2904_v3  ;;  %v3080_v23 = vunpack.i.h.bf16 %v3078_v63  ;;  %v3079_v14 = vunpack.i.l.bf16 %v3078_v63  ;;  %v3085_v59 = vunpack.i.h.bf16 %v3083_v13 }
 0x14a   : > { %v3084_v30 = vunpack.i.l.bf16 %v3083_v13  ;;  %v1944_v37 = vsel %vm1923_vm6, %v1911_v55, %v2944_v56  ;;  %v1945_v28 = vsel %vm1923_vm6, %v1912_v45, %v2945_v31  ;;  %v3090_v2 = vunpack.i.h.bf16 %v3088_v49 }
 0x14b   : > { %v3089_v53 = vunpack.i.l.bf16 %v3088_v49  ;;  %v3103_v11 = vpop.permute.xlu0 %3102  ;;  %v1977_v17 = vsel %vm1956_vm7, %v1944_v37, %v3074_v62  ;;  %v1978_v7 = vsel %vm1956_vm7, %v1945_v28, %v3075_v16  ;;  %v3095_v61 = vunpack.i.h.bf16 %v3093_v46  ;;  %v6093_v16 = vld [vmem:[#allocation21_spill] sm:$0xff] }
 0x14c   : > { %v3098_v9 = vpop.permute.xlu1 %3097  ;;  %v3094_v41 = vunpack.i.l.bf16 %v3093_v46  ;;  %v3105_v54 = vunpack.i.h.bf16 %v3103_v11  ;;  %v3104_v33 = vunpack.i.l.bf16 %v3103_v11  ;;  %v1961_v44 = vsel %vm1956_vm7, %v1928_v34, %v3079_v14  ;;  %v6092_v46 = vld [vmem:[#allocation9_spill] sm:$0xff]  ;;  %v6094_v34 = vld [vmem:[#allocation46_spill] sm:$0xff] }
 0x14d   : > { %v3100_v15 = vunpack.i.h.bf16 %v3098_v9  ;;  %v3099_v38 = vunpack.i.l.bf16 %v3098_v9  ;;  %v1962_v24 = vsel %vm1956_vm7, %v1929_v22, %v3080_v23  ;;  %v2010_v63 = vsel %vm1989_vm8, %v1977_v17, %v3084_v30  ;;  %v6095_v23 = vld [vmem:[#allocation38_spill] sm:$0xff]  ;;  %v6096_v30 = vld [vmem:[#allocation15_spill] sm:$0xff] }
 0x14e   : > { %v2011_v1 = vsel %vm1989_vm8, %v1978_v7, %v3085_v59  ;;  %v1994_v36 = vsel %vm1989_vm8, %v1961_v44, %v3089_v53  ;;  %v1995_v8 = vsel %vm1989_vm8, %v1962_v24, %v3090_v2  ;;  %v2043_v13 = vsel %vm2022_vm9, %v2010_v63, %v3094_v41  ;;  %v3401_v11 = vld [vmem:[#allocation2 + $0x50] sm:$0xff]  ;;  %v3402_v7 = vld [vmem:[#allocation2 + $0x48] sm:$0xff] }
 0x14f   : > { %v3113_v26 = vpop.permute.xlu0 %3112  ;;  %v2044_v5 = vsel %vm2022_vm9, %v2011_v1, %v3095_v61  ;;  %v2027_v35 = vsel %vm2022_vm9, %v1994_v36, %v3099_v38  ;;  %v2028_v27 = vsel %vm2022_vm9, %v1995_v8, %v3100_v15  ;;  %v2076_v58 = vsel %vm2055_vm10, %v2043_v13, %v3104_v33  ;;  %v3403_v41 = vld [vmem:[#allocation2 + $0x110] sm:$0xff]  ;;  %v3404_v38 = vld [vmem:[#allocation2 + $0x108] sm:$0xff]  ;;  %v2121_v8 = vld [vmem:[%s5703_s1] sm:$0xff] }
 0x150   : > { %v3108_v6 = vpop.permute.xlu1 %3107  ;;  %v3115_v18 = vunpack.i.h.bf16 %v3113_v26  ;;  %v3114_v60 = vunpack.i.l.bf16 %v3113_v26  ;;  %v2077_v57 = vsel %vm2055_vm10, %v2044_v5, %v3105_v54  ;;  %v2750_v19 = vunpack.i.h.bf16 %v6092_v46 }
 0x151   : > { %v3110_v21 = vunpack.i.h.bf16 %v3108_v6  ;;  %v3109_v50 = vunpack.i.l.bf16 %v3108_v6  ;;  %v2749_v12 = vunpack.i.l.bf16 %v6092_v46  ;;  %v2790_v62 = vunpack.i.h.bf16 %v6093_v16 }
 0x152   : > { %v2109_v3 = vsel %vm2088_vm11, %v2076_v58, %v3114_v60  ;;  %v2110_v49 = vsel %vm2088_vm11, %v2077_v57, %v3115_v18  ;;  %v2789_v55 = vunpack.i.l.bf16 %v6093_v16  ;;  %v2830_v22 = vunpack.i.h.bf16 %v6094_v34 }
 0x153   : > { %v2060_v10 = vsel %vm2055_vm10, %v2027_v35, %v3109_v50  ;;  %v2061_v42 = vsel %vm2055_vm10, %v2028_v27, %v3110_v21  ;;  %v2630_v51 = vpack.c.bf16 %v2110_v49, %v2109_v3  ;;  %v3123_v43 = vpop.permute.xlu0 %3122  ;;  %v2829_v9 = vunpack.i.l.bf16 %v6094_v34 }
 0x154   : > { %v3118_v48 = vpop.permute.xlu1 %3117  ;;  %v2870_v14 = vunpack.i.h.bf16 %v6095_v23  ;;  %v2869_v59 = vunpack.i.l.bf16 %v6095_v23  ;;  %v2910_v37 = vunpack.i.h.bf16 %v6096_v30  ;;  %v2909_v28 = vunpack.i.l.bf16 %v6096_v30  ;;  %v2123_v30 = vld [vmem:[%s5703_s1 + $0x10] sm:$0xff] }
 0x155   : > { %v3120_v0 = vunpack.i.h.bf16 %v3118_v48  ;;  %v3119_v52 = vunpack.i.l.bf16 %v3118_v48  ;;  %2632 = vmatprep.subr.msk.bf16.mxu0 %vm5258_vm13, %v2630_v51  ;;  %v2950_v2 = vunpack.i.h.bf16 %v5025_v25  ;;  %v1865_v17 = vsel %vm188_vm0, %v3401_v11, %v2750_v19 }
 0x156   : > { %v1864_v61 = vsel %vm188_vm0, %v3402_v7, %v2749_v12  ;;  %v1881_v15 = vsel %vm188_vm0, %v3403_v41, %v2790_v62  ;;  %v1880_v54 = vsel %vm188_vm0, %v3404_v38, %v2789_v55  ;;  %v2949_v33 = vunpack.i.l.bf16 %v5025_v25 }
 0x157   : > { %v2093_v32 = vsel %vm2088_vm11, %v2060_v10, %v3119_v52  ;;  %v2094_v4 = vsel %vm2088_vm11, %v2061_v42, %v3120_v0  ;;  %v3133_v45 = vpop.permute.xlu0 %3132  ;;  %v3125_v6 = vunpack.i.h.bf16 %v3123_v43  ;;  %v1898_v24 = vsel %vm1890_vm5, %v1865_v17, %v2830_v22  ;;  %v2122_v42 = vld [vmem:[%s5703_s1 + $0x8] sm:$0xff] }
 0x158   : > { %v2633_v31 = vpack.c.bf16 %v2094_v4, %v2093_v32  ;;  %v3128_v56 = vpop.permute.xlu1 %3127  ;;  %v1897_v63 = vsel %vm1890_vm5, %v1864_v61, %v2829_v9  ;;  %v1914_v1 = vsel %vm1890_vm5, %v1881_v15, %v2870_v14  ;;  %v3124_v36 = vunpack.i.l.bf16 %v3123_v43 }
 0x159   : > { %v1913_v21 = vsel %vm1890_vm5, %v1880_v54, %v2869_v59  ;;  %v1930_v50 = vsel %vm1923_vm6, %v1897_v63, %v2909_v28  ;;  %v1931_v26 = vsel %vm1923_vm6, %v1898_v24, %v2910_v37  ;;  %v1947_v25 = vsel %vm1923_vm6, %v1914_v1, %v2950_v2  ;;  %v2124_v24 = vld [vmem:[%s5703_s1 + $0x18] sm:$0xff] }
 0x15a   : > { %2635 = vmatpush3.bf16.xpose.msk.msra.mxu0 %vm5258_vm13, %v2633_v31  ;;  %v3130_v5 = vunpack.i.h.bf16 %v3128_v56  ;;  %v3129_v18 = vunpack.i.l.bf16 %v3128_v56  ;;  %v3135_v60 = vunpack.i.h.bf16 %v3133_v45  ;;  %v3134_v35 = vunpack.i.l.bf16 %v3133_v45  ;;  %v2130_v31 = vld [vmem:[%s5704_s2] sm:$0xff] }
 0x15b   : > { %v3143_v44 = vpop.permute.xlu0 %3142  ;;  %v1946_v27 = vsel %vm1923_vm6, %v1913_v21, %v2949_v33  ;;  %v1980_v58 = vsel %vm1956_vm7, %v1947_v25, %v3125_v6  ;;  %v3494_v16 = vmov 0  }
 0x15c   : > { %v3138_v53 = vpop.permute.xlu1 %3137  ;;  %v1979_v49 = vsel %vm1956_vm7, %v1946_v27, %v3124_v36  ;;  %v3145_v0 = vunpack.i.h.bf16 %v3143_v44  ;;  %v3144_v52 = vunpack.i.l.bf16 %v3143_v44  ;;  %v1963_v56 = vsel %vm1956_vm7, %v1930_v50, %v3129_v18  ;;  %3371 = vset.pattern.permute.xlu1 %v3494_v16 }
 0x15d   : > { %v3140_v57 = vunpack.i.h.bf16 %v3138_v53  ;;  %v3139_v48 = vunpack.i.l.bf16 %v3138_v53  ;;  %v1964_v46 = vsel %vm1956_vm7, %v1931_v26, %v3130_v5  ;;  %v2012_v19 = vsel %vm1989_vm8, %v1979_v49, %v3134_v35  ;;  %2133 = vperm.xlu1 %3371, %v2130_v31  }
 0x15e   : > { %v2013_v12 = vsel %vm1989_vm8, %v1980_v58, %v3135_v60  ;;  %v2045_v9 = vsel %vm2022_vm9, %v2012_v19, %v3144_v52 }
 0x15f   : > { %v3153_v3 = vpop.permute.xlu0 %3152  ;;  %v1996_v62 = vsel %vm1989_vm8, %v1963_v56, %v3139_v48  ;;  %v1997_v55 = vsel %vm1989_vm8, %v1964_v46, %v3140_v57  ;;  %v2046_v23 = vsel %vm2022_vm9, %v2013_v12, %v3145_v0 }
 0x160   : > { %v3148_v13 = vpop.permute.xlu1 %3147  ;;  %v3155_v43 = vunpack.i.h.bf16 %v3153_v3  ;;  %v3154_v32 = vunpack.i.l.bf16 %v3153_v3 }
 0x161   : > { %v3150_v10 = vunpack.i.h.bf16 %v3148_v13  ;;  %v3149_v51 = vunpack.i.l.bf16 %v3148_v13  ;;  %v2126_v13 = vld [vmem:[%s5703_s1 + $0x28] sm:$0xff] }
 0x162   : > { %v2078_v2 = vsel %vm2055_vm10, %v2045_v9, %v3154_v32  ;;  %v2079_v53 = vsel %vm2055_vm10, %v2046_v23, %v3155_v43 }
 0x163   : > { %v3163_v22 = vpop.permute.xlu0 %3162  ;;  %v2029_v37 = vsel %vm2022_vm9, %v1996_v62, %v3149_v51  ;;  %v2030_v28 = vsel %vm2022_vm9, %v1997_v55, %v3150_v10  ;;  %v2127_v10 = vld [vmem:[%s5703_s1 + $0x30] sm:$0xff] }
 0x164   : > { %2136 = vxpose.xlu0.b32.start [1/9] (short) (narrow) %v2121_v8, 8  ;;  %v3158_v4 = vpop.permute.xlu1 %3157  ;;  %v3165_v14 = vunpack.i.h.bf16 %v3163_v22  ;;  %v3164_v59 = vunpack.i.l.bf16 %v3163_v22  ;;  %v2125_v8 = vld [vmem:[%s5703_s1 + $0x20] sm:$0xff] }
 0x165   : > { %v3160_v45 = vunpack.i.h.bf16 %v3158_v4  ;;  %v3159_v34 = vunpack.i.l.bf16 %v3158_v4 }
 0x166   : > { %v2111_v17 = vsel %vm2088_vm11, %v2078_v2, %v3164_v59  ;;  %v2112_v7 = vsel %vm2088_vm11, %v2079_v53, %v3165_v14 }
 0x167   : > { %v2062_v15 = vsel %vm2055_vm10, %v2029_v37, %v3159_v34  ;;  %v2063_v38 = vsel %vm2055_vm10, %v2030_v28, %v3160_v45  ;;  %v2636_v54 = vpack.c.bf16 %v2112_v7, %v2111_v17  ;;  %v3173_v33 = vpop.permute.xlu0 %3172 }
 0x168   : > { %2137 = vxpose.xlu0.b32.cont [2/9] (short) (narrow) %v2122_v42, 8  ;;  %v3168_v11 = vpop.permute.xlu1 %3167  ;;  %v3175_v26 = vunpack.i.h.bf16 %v3173_v33  ;;  %v3174_v25 = vunpack.i.l.bf16 %v3173_v33 }
 0x169   : > { %v3170_v61 = vunpack.i.h.bf16 %v3168_v11  ;;  %v3169_v41 = vunpack.i.l.bf16 %v3168_v11  ;;  %2638 = vmatprep.subr.msk.bf16.mxu0 %vm5258_vm13, %v2636_v54 }
 0x16a   : > { %v1981_v3 = vsel %vm1956_vm7, %v5055_v39, %v3174_v25  ;;  %v1982_v49 = vsel %vm1956_vm7, %v5058_v20, %v3175_v26 }
 0x16b   : > { %v2095_v6 = vsel %vm2088_vm11, %v2062_v15, %v3169_v41  ;;  %v2096_v44 = vsel %vm2088_vm11, %v2063_v38, %v3170_v61  ;;  %v3183_v36 = vpop.permute.xlu0 %3182  ;;  %v2129_v38 = vld [vmem:[%s5703_s1 + $0x40] sm:$0xff] }
 0x16c   : > { %2138 = vxpose.xlu0.b32.cont [3/9] (short) (narrow) %v2123_v30, 8  ;;  %v2639_v63 = vpack.c.bf16 %v2096_v44, %v2095_v6  ;;  %v3178_v1 = vpop.permute.xlu1 %3177  ;;  %v3185_v35 = vunpack.i.h.bf16 %v3183_v36  ;;  %v3184_v27 = vunpack.i.l.bf16 %v3183_v36 }
 0x16d   : > { %v3180_v18 = vunpack.i.h.bf16 %v3178_v1  ;;  %v3179_v60 = vunpack.i.l.bf16 %v3178_v1 }
 0x16e   : > { %2641 = vmatpush3.bf16.xpose.msk.msra.mxu0 %vm5258_vm13, %v2639_v63  ;;  %v2014_v56 = vsel %vm1989_vm8, %v1981_v3, %v3184_v27  ;;  %v2015_v20 = vsel %vm1989_vm8, %v1982_v49, %v3185_v35  ;;  %v6098_v35 = vld [vmem:[#allocation47_spill] sm:$0xff] }
 0x16f   : > { %v3193_v50 = vpop.permute.xlu0 %3192  ;;  %v1965_v31 = vsel %vm1956_vm7, %v4899_v40, %v3179_v60  ;;  %v1966_v39 = vsel %vm1956_vm7, %v4902_v29, %v3180_v18  ;;  %v2128_v29 = vld [vmem:[%s5703_s1 + $0x38] sm:$0xff]  ;;  %v6097_v18 = vld [vmem:[#allocation42_spill] sm:$0xff] }
 0x170   : > { %2139 = vxpose.xlu0.b32.cont [4/9] (short) (narrow) %v2124_v24, 8  ;;  %v3188_v21 = vpop.permute.xlu1 %3187  ;;  %v3195_v0 = vunpack.i.h.bf16 %v3193_v50  ;;  %v3194_v52 = vunpack.i.l.bf16 %v3193_v50 }
 0x171   : > { %v3190_v58 = vunpack.i.h.bf16 %v3188_v21  ;;  %v3189_v57 = vunpack.i.l.bf16 %v3188_v21 }
 0x172   : > { %v2047_v45 = vsel %vm2022_vm9, %v2014_v56, %v3194_v52  ;;  %v2048_v34 = vsel %vm2022_vm9, %v2015_v20, %v3195_v0 }
 0x173   : > { %v3203_v48 = vpop.permute.xlu0 %3202  ;;  %v1998_v46 = vsel %vm1989_vm8, %v1965_v31, %v3189_v57  ;;  %v1999_v19 = vsel %vm1989_vm8, %v1966_v39, %v3190_v58 }
 0x174   : > { %2140 = vxpose.xlu0.b32.cont [5/9] (short) (narrow) %v2125_v8, 8  ;;  %v3198_v5 = vpop.permute.xlu1 %3197  ;;  %v3205_v43 = vunpack.i.h.bf16 %v3203_v48  ;;  %v3204_v32 = vunpack.i.l.bf16 %v3203_v48 }
 0x175   : > { %v3200_v42 = vunpack.i.h.bf16 %v3198_v5  ;;  %v3199_v51 = vunpack.i.l.bf16 %v3198_v5 }
 0x176   : > { %v2080_v14 = vsel %vm2055_vm10, %v2047_v45, %v3204_v32  ;;  %v2081_v59 = vsel %vm2055_vm10, %v2048_v34, %v3205_v43 }
 0x177   : > { %v3213_v55 = vpop.permute.xlu0 %3212  ;;  %v2031_v9 = vsel %vm2022_vm9, %v1998_v46, %v3199_v51  ;;  %v2032_v23 = vsel %vm2022_vm9, %v1999_v19, %v3200_v42  ;;  %v6100_v51 = vld [vmem:[#allocation18_spill] sm:$0xff] }
 0x178   : > { %2141 = vxpose.xlu0.b32.cont [6/9] (short) (narrow) %v2126_v13, 8  ;;  %v3208_v4 = vpop.permute.xlu1 %3207  ;;  %v3215_v40 = vunpack.i.h.bf16 %v3213_v55  ;;  %v3214_v22 = vunpack.i.l.bf16 %v3213_v55 }
 0x179   : > { %v3210_v12 = vunpack.i.h.bf16 %v3208_v4  ;;  %v3209_v62 = vunpack.i.l.bf16 %v3208_v4 }
 0x17a   : > { %v2113_v37 = vsel %vm2088_vm11, %v2080_v14, %v3214_v22  ;;  %v2114_v28 = vsel %vm2088_vm11, %v2081_v59, %v3215_v40 }
 0x17b   : > { %v2064_v11 = vsel %vm2055_vm10, %v2031_v9, %v3209_v62  ;;  %v2065_v17 = vsel %vm2055_vm10, %v2032_v23, %v3210_v12  ;;  %v2642_v7 = vpack.c.bf16 %v2114_v28, %v2113_v37  ;;  %v3223_v61 = vpop.permute.xlu0 %3222 }
 0x17c   : > { %2142 = vxpose.xlu0.b32.cont [7/9] (short) (narrow) %v2127_v10, 8  ;;  %v3218_v30 = vpop.permute.xlu1 %3217  ;;  %v3225_v63 = vunpack.i.h.bf16 %v3223_v61  ;;  %v3224_v1 = vunpack.i.l.bf16 %v3223_v61  ;;  %v6099_v10 = vld [vmem:[#allocation16_spill] sm:$0xff] }
 0x17d   : > { %v3220_v2 = vunpack.i.h.bf16 %v3218_v30  ;;  %v3219_v53 = vunpack.i.l.bf16 %v3218_v30  ;;  %2644 = vmatprep.subr.msk.bf16.mxu0 %vm5258_vm13, %v2642_v7 }
 0x17e   : > { %v1984_v60 = vsel %vm1956_vm7, %v6097_v18, %v3225_v63  ;;  %v1983_v27 = vsel %vm1956_vm7, %v6098_v35, %v3224_v1 }
 0x17f   : > { %v2097_v41 = vsel %vm2088_vm11, %v2064_v11, %v3219_v53  ;;  %v2098_v15 = vsel %vm2088_vm11, %v2065_v17, %v3220_v2  ;;  %v3233_v6 = vpop.permute.xlu0 %3232 }
 0x180   : > { %2143 = vxpose.xlu0.b32.cont [8/9] (short) (narrow) %v2128_v29, 8  ;;  %v2645_v54 = vpack.c.bf16 %v2098_v15, %v2097_v41  ;;  %v3228_v33 = vpop.permute.xlu1 %3227  ;;  %v3235_v50 = vunpack.i.h.bf16 %v3233_v6  ;;  %v3234_v26 = vunpack.i.l.bf16 %v3233_v6 }
 0x181   : > { %v3230_v8 = vunpack.i.h.bf16 %v3228_v33  ;;  %v3229_v21 = vunpack.i.l.bf16 %v3228_v33 }
 0x182   : > { %2647 = vmatpush3.bf16.xpose.msk.msra.mxu0 %vm5258_vm13, %v2645_v54  ;;  %v2016_v32 = vsel %vm1989_vm8, %v1983_v27, %v3234_v26  ;;  %v2017_v4 = vsel %vm1989_vm8, %v1984_v60, %v3235_v50  ;;  %v6102_v26 = vld [vmem:[#allocation50_spill] sm:$0xff] }
 0x183   : > { %v1967_v42 = vsel %vm1956_vm7, %v6099_v10, %v3229_v21  ;;  %v1968_v43 = vsel %vm1956_vm7, %v6100_v51, %v3230_v8  ;;  %v6101_v21 = vld [vmem:[#allocation19_spill] sm:$0xff] }
 0x184   : > { %2144 = vxpose.xlu0.b32.end [9/9] (short) (narrow) %v2129_v38, 8  ;;  %v3238_v44 = vpop.permute.xlu1 %3237  ;;  %v3243_v24 = vpop.permute.xlu0 %3242 }
 0x185   : > { %v3240_v25 = vunpack.i.h.bf16 %v3238_v44  ;;  %v3239_v13 = vunpack.i.l.bf16 %v3238_v44  ;;  %v3245_v58 = vunpack.i.h.bf16 %v3243_v24  ;;  %v3244_v57 = vunpack.i.l.bf16 %v3243_v24 }
 0x187   : > { %v2000_v31 = vsel %vm1989_vm8, %v1967_v42, %v3239_v13  ;;  %v2001_v39 = vsel %vm1989_vm8, %v1968_v43, %v3240_v25  ;;  %v2049_v19 = vsel %vm2022_vm9, %v2016_v32, %v3244_v57  ;;  %v2050_v12 = vsel %vm2022_vm9, %v2017_v4, %v3245_v58  ;;  %v6103_v57 = vld [vmem:[#allocation41_spill] sm:$0xff] }
 0x188   : > { %v3248_v36 = vpop.permute.xlu1 %3247  ;;  %v3253_v5 = vpop.permute.xlu0 %3252 }
 0x189   : > { %v3250_v48 = vunpack.i.h.bf16 %v3248_v36  ;;  %v3249_v3 = vunpack.i.l.bf16 %v3248_v36  ;;  %v3255_v49 = vunpack.i.h.bf16 %v3253_v5  ;;  %v3254_v0 = vunpack.i.l.bf16 %v3253_v5 }
 0x18b   : > { %v2033_v45 = vsel %vm2022_vm9, %v2000_v31, %v3249_v3  ;;  %v2034_v34 = vsel %vm2022_vm9, %v2001_v39, %v3250_v48  ;;  %v2082_v40 = vsel %vm2055_vm10, %v2049_v19, %v3254_v0  ;;  %v2083_v22 = vsel %vm2055_vm10, %v2050_v12, %v3255_v49  ;;  %v6104_v3 = vld [vmem:[#allocation17_spill] sm:$0xff] }
 0x18c   : > { %v3258_v52 = vpop.permute.xlu1 %3257  ;;  %v3263_v46 = vpop.permute.xlu0 %3262 }
 0x18d   : > { %v3260_v56 = vunpack.i.h.bf16 %v3258_v52  ;;  %v3259_v20 = vunpack.i.l.bf16 %v3258_v52  ;;  %v3265_v62 = vunpack.i.h.bf16 %v3263_v46  ;;  %v3264_v55 = vunpack.i.l.bf16 %v3263_v46 }
 0x18f   : > { %v2115_v9 = vsel %vm2088_vm11, %v2082_v40, %v3264_v55  ;;  %v2116_v23 = vsel %vm2088_vm11, %v2083_v22, %v3265_v62  ;;  %v2066_v30 = vsel %vm2055_vm10, %v2033_v45, %v3259_v20  ;;  %v2067_v37 = vsel %vm2055_vm10, %v2034_v34, %v3260_v56 }
 0x190   : > { %v3268_v29 = vpop.permute.xlu1 %3267  ;;  %v2648_v28 = vpack.c.bf16 %v2116_v23, %v2115_v9 }
 0x191   : > { %v3270_v14 = vunpack.i.h.bf16 %v3268_v29  ;;  %v3269_v59 = vunpack.i.l.bf16 %v3268_v29  ;;  %v3273_v2 = vpop.permute.xlu0 %3272 }
 0x192   : > { %2650 = vmatprep.subr.msk.bf16.mxu0 %vm5258_vm13, %v2648_v28  ;;  %v3275_v38 = vunpack.i.h.bf16 %v3273_v2  ;;  %v3274_v54 = vunpack.i.l.bf16 %v3273_v2 }
 0x193   : > { %v2099_v53 = vsel %vm2088_vm11, %v2066_v30, %v3269_v59  ;;  %v2100_v11 = vsel %vm2088_vm11, %v2067_v37, %v3270_v14 }
 0x194   : > { %v2651_v17 = vpack.c.bf16 %v2100_v11, %v2099_v53  ;;  %v3278_v7 = vpop.permute.xlu1 %3277  ;;  %v1985_v50 = vsel %vm1956_vm7, %v6101_v21, %v3274_v54  ;;  %v1986_v25 = vsel %vm1956_vm7, %v6102_v26, %v3275_v38 }
 0x195   : > { %v3283_v61 = vpop.permute.xlu0 %3282  ;;  %v3280_v6 = vunpack.i.h.bf16 %v3278_v7  ;;  %v3279_v44 = vunpack.i.l.bf16 %v3278_v7 }
 0x196   : > { %2653 = vmatpush3.bf16.xpose.msk.msra.mxu0 %vm5258_vm13, %v2651_v17  ;;  %v3285_v24 = vunpack.i.h.bf16 %v3283_v61  ;;  %v3284_v63 = vunpack.i.l.bf16 %v3283_v61 }
 0x197   : > { %v1969_v48 = vsel %vm1956_vm7, %v6103_v57, %v3279_v44  ;;  %v1970_v49 = vsel %vm1956_vm7, %v6104_v3, %v3280_v6  ;;  %v6105_v44 = vld [vmem:[#allocation34_spill] sm:$0xff] }
 0x198   : > { %v3288_v41 = vpop.permute.xlu1 %3287  ;;  %v2018_v0 = vsel %vm1989_vm8, %v1985_v50, %v3284_v63  ;;  %v2019_v52 = vsel %vm1989_vm8, %v1986_v25, %v3285_v24  ;;  %v6106_v63 = vld [vmem:[#allocation48_spill] sm:$0xff] }
 0x199   : > { %v3293_v15 = vpop.permute.xlu0 %3292  ;;  %v3290_v1 = vunpack.i.h.bf16 %v3288_v41  ;;  %v3289_v36 = vunpack.i.l.bf16 %v3288_v41 }
 0x19a   : > { %v3295_v13 = vunpack.i.h.bf16 %v3293_v15  ;;  %v3294_v5 = vunpack.i.l.bf16 %v3293_v15 }
 0x19b   : > { %v2002_v10 = vsel %vm1989_vm8, %v1969_v48, %v3289_v36  ;;  %v2003_v42 = vsel %vm1989_vm8, %v1970_v49, %v3290_v1 }
 0x19c   : > { %v3298_v33 = vpop.permute.xlu1 %3297  ;;  %v2051_v4 = vsel %vm2022_vm9, %v2018_v0, %v3294_v5  ;;  %v2052_v31 = vsel %vm2022_vm9, %v2019_v52, %v3295_v13  ;;  %v6107_v13 = vld [vmem:[#allocation43_spill] sm:$0xff] }
 0x19d   : > { %v3303_v8 = vpop.permute.xlu0 %3302  ;;  %v3300_v18 = vunpack.i.h.bf16 %v3298_v33  ;;  %v3299_v60 = vunpack.i.l.bf16 %v3298_v33 }
 0x19e   : > { %v3305_v35 = vunpack.i.h.bf16 %v3303_v8  ;;  %v3304_v27 = vunpack.i.l.bf16 %v3303_v8 }
 0x19f   : > { %v2035_v20 = vsel %vm2022_vm9, %v2002_v10, %v3299_v60  ;;  %v2036_v46 = vsel %vm2022_vm9, %v2003_v42, %v3300_v18  ;;  %v6108_v18 = vld [vmem:[#allocation20_spill] sm:$0xff] }
 0x1a0   : > { %v3308_v58 = vpop.permute.xlu1 %3307  ;;  %v2084_v19 = vsel %vm2055_vm10, %v2051_v4, %v3304_v27  ;;  %v2085_v12 = vsel %vm2055_vm10, %v2052_v31, %v3305_v35 }
 0x1a1   : > { %v3310_v51 = vunpack.i.h.bf16 %v3308_v58  ;;  %v3309_v43 = vunpack.i.l.bf16 %v3308_v58  ;;  %v3313_v32 = vpop.permute.xlu0 %3312 }
 0x1a2   : > { %v3315_v39 = vunpack.i.h.bf16 %v3313_v32  ;;  %v3314_v56 = vunpack.i.l.bf16 %v3313_v32 }
 0x1a3   : > { %v2068_v22 = vsel %vm2055_vm10, %v2035_v20, %v3309_v43  ;;  %v2069_v29 = vsel %vm2055_vm10, %v2036_v46, %v3310_v51 }
 0x1a4   : > { %v3318_v62 = vpop.permute.xlu1 %3317  ;;  %v2117_v55 = vsel %vm2088_vm11, %v2084_v19, %v3314_v56  ;;  %v2118_v45 = vsel %vm2088_vm11, %v2085_v12, %v3315_v39 }
 0x1a5   : > { %v3320_v34 = vunpack.i.h.bf16 %v3318_v62  ;;  %v3319_v40 = vunpack.i.l.bf16 %v3318_v62  ;;  %v2654_v9 = vpack.c.bf16 %v2118_v45, %v2117_v55 }
 0x1a6   : > { %v3323_v23 = vpop.permute.xlu0 %3322 }
 0x1a7   : > { %v2101_v14 = vsel %vm2088_vm11, %v2068_v22, %v3319_v40  ;;  %v2102_v59 = vsel %vm2088_vm11, %v2069_v29, %v3320_v34  ;;  %2656 = vmatprep.subr.msk.bf16.mxu0 %vm5258_vm13, %v2654_v9  ;;  %v3325_v11 = vunpack.i.h.bf16 %v3323_v23  ;;  %v3324_v17 = vunpack.i.l.bf16 %v3323_v23 }
 0x1a8   : > { %v2657_v30 = vpack.c.bf16 %v2102_v59, %v2101_v14  ;;  %v3328_v37 = vpop.permute.xlu1 %3327 }
 0x1a9   : > { %v3330_v61 = vunpack.i.h.bf16 %v3328_v37  ;;  %v3329_v41 = vunpack.i.l.bf16 %v3328_v37  ;;  %v1988_v24 = vsel %vm1956_vm7, %v6105_v44, %v3325_v11  ;;  %v1987_v1 = vsel %vm1956_vm7, %v6106_v63, %v3324_v17 }
 0x1aa   : > { %2659 = vmatpush3.bf16.xpose.msk.msra.mxu0 %vm5258_vm13, %v2657_v30 }
 0x1ab   : > { %v3333_v28 = vpop.permute.xlu0 %3332  ;;  %v1971_v5 = vsel %vm1956_vm7, %v6107_v13, %v3329_v41  ;;  %v1972_v60 = vsel %vm1956_vm7, %v6108_v18, %v3330_v61 }
 0x1ac   : > { %v3335_v15 = vunpack.i.h.bf16 %v3333_v28  ;;  %v3334_v38 = vunpack.i.l.bf16 %v3333_v28 }
 0x1ad   : > { %3372 = vset.pattern.permute.xlu0 %v3494_v16 }
 0x1ae   : > { %v3338_v2 = vpop.permute.xlu1 %3337  ;;  %v2020_v35 = vsel %vm1989_vm8, %v1987_v1, %v3334_v38  ;;  %v2021_v27 = vsel %vm1989_vm8, %v1988_v24, %v3335_v15 }
 0x1af   : > { %v3340_v54 = vunpack.i.h.bf16 %v3338_v2  ;;  %v3339_v33 = vunpack.i.l.bf16 %v3338_v2 }
 0x1b0   : > { %v3343_v53 = vpop.permute.xlu0 %3342 }
 0x1b1   : > { %v3345_v36 = vunpack.i.h.bf16 %v3343_v53  ;;  %v3344_v16 = vunpack.i.l.bf16 %v3343_v53  ;;  %v2004_v58 = vsel %vm1989_vm8, %v1971_v5, %v3339_v33  ;;  %v2005_v57 = vsel %vm1989_vm8, %v1972_v60, %v3340_v54 }
 0x1b2   : > { %v3348_v7 = vpop.permute.xlu1 %3347 }
 0x1b3   : > { %v3350_v8 = vunpack.i.h.bf16 %v3348_v7  ;;  %v3349_v21 = vunpack.i.l.bf16 %v3348_v7  ;;  %v2053_v0 = vsel %vm2022_vm9, %v2020_v35, %v3344_v16  ;;  %v2054_v52 = vsel %vm2022_vm9, %v2021_v27, %v3345_v36 }
 0x1b4   : > { %v3353_v6 = vpop.permute.xlu0 %3352 }
 0x1b5   : > { %v3355_v50 = vunpack.i.h.bf16 %v3353_v6  ;;  %v3354_v26 = vunpack.i.l.bf16 %v3353_v6  ;;  %v2037_v51 = vsel %vm2022_vm9, %v2004_v58, %v3349_v21  ;;  %v2038_v43 = vsel %vm2022_vm9, %v2005_v57, %v3350_v8 }
 0x1b6   : > { %v3358_v25 = vpop.permute.xlu1 %3357 }
 0x1b7   : > { %v3360_v48 = vunpack.i.h.bf16 %v3358_v25  ;;  %v3359_v3 = vunpack.i.l.bf16 %v3358_v25  ;;  %v2086_v32 = vsel %vm2055_vm10, %v2053_v0, %v3354_v26  ;;  %v2087_v4 = vsel %vm2055_vm10, %v2054_v52, %v3355_v50 }
 0x1b8   : > { %v3363_v49 = vpop.permute.xlu0 %3362 }
 0x1b9   : > { %v3365_v10 = vunpack.i.h.bf16 %v3363_v49  ;;  %v3364_v42 = vunpack.i.l.bf16 %v3363_v49  ;;  %v2070_v19 = vsel %vm2055_vm10, %v2037_v51, %v3359_v3  ;;  %v2071_v12 = vsel %vm2055_vm10, %v2038_v43, %v3360_v48 }
 0x1ba   : > { %v3368_v31 = vpop.permute.xlu1 %3367 }
 0x1bb   : > { %v2119_v39 = vsel %vm2088_vm11, %v2086_v32, %v3364_v42  ;;  %v2120_v56 = vsel %vm2088_vm11, %v2087_v4, %v3365_v10  ;;  %v3370_v20 = vunpack.i.h.bf16 %v3368_v31  ;;  %v3369_v46 = vunpack.i.l.bf16 %v3368_v31 }
 0x1bc   : > { %v2660_v62 = vpack.c.bf16 %v2120_v56, %v2119_v39 }
 0x1bd   : > { %v2103_v55 = vsel %vm2088_vm11, %v2070_v19, %v3369_v46  ;;  %v2104_v45 = vsel %vm2088_vm11, %v2071_v12, %v3370_v20 }
 0x1be   : > { %v2663_v34 = vpack.c.bf16 %v2104_v45, %v2103_v55  ;;  %2662 = vmatprep.subr.msk.bf16.mxu0 %vm5258_vm13, %v2660_v62 }
 0x1c0   : > { %2665 = vmatpush3.bf16.xpose.msk.msra.mxu0 %vm5258_vm13, %v2663_v34 }
 0x1dc   : > { %v2134_v22 = vpop.permute.xlu1 %2133 }
 0x1e4   : > { %v2152_v40 = vpop.trf.xlu0 }
 0x1e5   : > { %2616 = vmatprep.mubr.msk.f32.mxu0 %vm2168_vm12, %v2152_v40 }
 0x1e6   : > { %2617 = vmatmul.mubr.msk.f32.vlgmr.msra.gmra.mrb[0].mxu0 %vm2168_vm12, %v2152_v40 }
 0x2b9   : > { %v2334_v29 = vpop.f32.mrb[0].mxu0 }
 0x2ba   : > { %v2335_v9 = vadd.f32 %v2334_v29, %v2134_v22  ;;  %v2336_v23 = vpop.f32.mrb[1].mxu0 }
 0x2bb   : > { %v2337_v14 = vadd.f32 %v2336_v23, %v2134_v22 }
 0x2bc   : > { %v2339_v59 = vmax.f32 %v2335_v9, 0.0 }
 0x2bd   : > { %v2340_v30 = vmax.f32 %v2337_v14, 0.0 }
 0x2be   : > { %2341 = vst [vmem:[%s177_s28] sm:$0xff] %v2339_v59 }
 0x2bf   : > { %2342 = vst [vmem:[%s177_s28 + $0x8] sm:$0xff] %v2340_v30 }
 0x2c0   : > { %3418 = shalt.err (!%p3415_p5)
}
 0x2c1   : > { %s3419_s10 = scalar_lea.hbm %s5655_s5, 256  ;;  %s3423_s19 = scalar_lea.hbm %s5705_s3, 512 }
 0x2c2   : > { %p3420_p6 = scmp.ne.s32.totalorder %s5655_s5, %s3419_s10  ;;  %p3424_p10 = scmp.lt.u32.totalorder %s5655_s5, %s5705_s3 }
 0x2c3   : > { %p3425_p11 = scmp.lt.u32.totalorder %s3423_s19, %s3419_s10  ;;  %p3427_p13 = scmp.lt.u32.totalorder %s3419_s10, %s5655_s5 }
 0x2c4   : > { %p3421_p7 = pnand %p3420_p6, %p3556_p4 }
 0x2c5   : > { %p3426_p12 = por %p3425_p11, %p3424_p10 }
 0x2c6   : > { %p3422_p9 = pneg %p3421_p7 }
 0x2c7   : > { %p3428_p0 = por %p3427_p13, %p3426_p12 }
 0x2c9   : > { %p3429_p1 = pnand %p3428_p0, %p3422_p9 }
 0x2cb   : > { %3432 = shalt.err (!%p3429_p1)
}
 0x2cc   : > { %2666 = dma.vmem_to_hbm [thread:$0]  (%p3556_p4), %s5657_s29, 256, %s5655_s5, %s2344_s6  }
 0x2cd PF: > { %p2672_p2 = scmp.ge.s32.totalorder %s3483_s17, 2  ;;  %s2372_s26 = sand.u32 1, %s3463_s12  }
 0x2ce   : > { %s2373_s27 = scalar_lea.sflag [#allocation4], %s2372_s26 }
 0x2cf   : > { %p2669_p3 = pnand %p2672_p2, %p3563_p8 }
 0x2d1   : > { %3458 = dma.done.wait (!%p2669_p3), %s2373_s27, 256  }
 0x2d2   : > { %3460 = vsyncadd (!%p2669_p3), %s2373_s27, 4294967040  ;;  %s16_s17 = sadd.s32 1, %s3483_s17   ;;  %s6109_s12 = smov %s3467_s13 }
 0x2d3   : > { %p13_p5 = scmp.ge.s32.totalorder %s16_s17, 4   ;;  %s6110_s13 = smov %s3471_s14 }
 0x2d4   : > { %s6111_s14 = smov %s3569_s25  ;;  %s6112_s15 = smov %s3479_s16 }
 0x2d5   : > { %s6113_s16 = smov %s6115_s20  ;;  %15 = sbr.rel (!%p13_p5) target bundleno = 4 (0x4), region = 75 }
 0x2dc   :  { %2378 = vsyncpa [#allocation4], 1 }
 0x2dd   :  { %2380 = vsyncpa [#allocation4 + $0x1], 1 }

</bundles_post_ra>
